<compile_context>
chip_gen: v7x
topology: tpu7x:2x2x1
jax: 0.10.0
libtpu: 0.0.40
codegen_flags: <defaults>
</compile_context>

<pallas_src>
import math
import jax
import jax.numpy as jnp
import numpy as np
from jax.experimental import pallas as pl
from jax.experimental.pallas import tpu as pltpu

# ---- small config consistent with the module (scaled-down defaults) ----------
IMAGE_SIZE   = 16
PATCH_SIZE   = 8
N_CHANNELS   = 4
EMBED_DIM    = 32
ACTION_SPACE = 5
N_LAYERS     = 2
N_HEADS      = 4                      # embed_dim % n_heads == 0 -> head_dim = 8
HEAD_DIM     = EMBED_DIM // N_HEADS
N_PATCHES    = (IMAGE_SIZE // PATCH_SIZE) ** 2
PATCH_DIM    = N_CHANNELS * PATCH_SIZE * PATCH_SIZE
SEQ          = N_PATCHES + 1
FFN_DIM      = 4 * EMBED_DIM
LN_EPS       = 1e-5
OUT_PAD      = 128                    # lane-dense head output width
MASK_NEG     = -1e30                  # additive mask for cross-image attention


def _layer_norm(x, w):
    # PyTorch LayerNorm(bias=False): (x - mu) / sqrt(var + eps) * w   (f32 math)
    mu = jnp.mean(x, axis=-1, keepdims=True)
    xc = x - mu
    var = jnp.mean(xc * xc, axis=-1, keepdims=True)
    return xc * jax.lax.rsqrt(var + LN_EPS) * w


def vit_kernel(patch_ref, wp_ref, addv_ref, mask_ref, ln_ref,
               wattn_ref, w1_ref, w2_ref, wh_ref, bh_ref, out_ref):
    D, H, DH, L = EMBED_DIM, N_HEADS, HEAD_DIM, N_LAYERS
    scale = 1.0 / math.sqrt(DH)

    # Patch embedding over the stacked (BB*SEQ, PATCH_DIM) block.  The CLS slot
    # of every image is a zero row, so a single matmul + one vector add builds
    # the full (cls | patch_embed) + bias + positional-embedding activations.
    x = jnp.dot(patch_ref[...].astype(jnp.bfloat16), wp_ref[...],
                preferred_element_type=jnp.float32)
    x = x + addv_ref[...]                                   # (M, D) f32

    mask_b = mask_ref[...]                                  # (M, M) block-diag bias

    for l in range(L):
        # ---- self-attention block (norm_first, bias-free, dropout=0) ----
        h = _layer_norm(x, ln_ref[2 * l:2 * l + 1, :]).astype(jnp.bfloat16)
        w_l = wattn_ref[l]                                  # (D, 4D) bf16
        qkv = jnp.dot(h, w_l[:, :3 * D],
                      preferred_element_type=jnp.float32)   # (M, 3D) fused QKV
        heads = []
        for hd in range(H):
            q = qkv[:, hd * DH:(hd + 1) * DH].astype(jnp.bfloat16)
            k = qkv[:, D + hd * DH:D + (hd + 1) * DH].astype(jnp.bfloat16)
            v = qkv[:, 2 * D + hd * DH:2 * D + (hd + 1) * DH].astype(jnp.bfloat16)
            s = jax.lax.dot_general(q, k, (((1,), (1,)), ((), ())),
                                    preferred_element_type=jnp.float32)
            s = s * scale + mask_b                          # per-image attention
            m = jnp.max(s, axis=-1, keepdims=True)
            p = jnp.exp(s - m)
            p = p * pl.reciprocal(jnp.sum(p, axis=-1, keepdims=True), approx=True)
            heads.append(jnp.dot(p.astype(jnp.bfloat16), v,
                                 preferred_element_type=jnp.float32))
        o_cat = jnp.concatenate(heads, axis=-1).astype(jnp.bfloat16)   # (M, D)
        x = x + jnp.dot(o_cat, w_l[:, 3 * D:],
                        preferred_element_type=jnp.float32)            # fused Wo

        # ---- feed-forward block (norm_first, ReLU, bias-free, dropout=0) ----
        h2 = _layer_norm(x, ln_ref[2 * l + 1:2 * l + 2, :]).astype(jnp.bfloat16)
        ff = jnp.maximum(jnp.dot(h2, w1_ref[l],
                                 preferred_element_type=jnp.float32), 0.0)
        x = x + jnp.dot(ff.astype(jnp.bfloat16), w2_ref[l],
                        preferred_element_type=jnp.float32)

    # ---- MLP head (computed for every row; wrapper keeps CLS rows only).
    # One wide, lane-dense, unmasked (M, OUT_PAD) store per grid step.
    hh = _layer_norm(x, ln_ref[2 * L:2 * L + 1, :]).astype(jnp.bfloat16)
    out_ref[...] = jnp.dot(hh, wh_ref[...],
                           preferred_element_type=jnp.float32) + bh_ref[...]


def image2patch(image, patch_size):
    # exact replica of the torch image2patch (row-major reshape + permute)
    B, C, Hh, W = image.shape
    p = patch_size
    x = image.reshape(B, C, Hh // p, W // p, p, p)
    x = jnp.transpose(x, (0, 2, 3, 4, 5, 1))
    return x.reshape(B, (Hh // p) * (W // p), p * p * C)


def vit_forward_pallas(image, params):
    patches = image2patch(image, PATCH_SIZE)                # (B, P, patch_dim)
    B = patches.shape[0]
    L, D, A = N_LAYERS, EMBED_DIM, ACTION_SPACE

    # Batch block: keep BB*SEQ a multiple of 8 (sublane tiling) unless the whole
    # batch fits in a single grid step anyway.
    BB = 8 if (B % 8 == 0) else B
    assert B % BB == 0
    M = BB * SEQ
    grid = (B // BB,)

    # Prepend a zero "CLS slot" row per image, flatten to a (B*SEQ, patch_dim)
    # slab so the kernel's patch-embed matmul directly produces (M, D).
    patches_p = jnp.concatenate(
        [jnp.zeros((B, 1, PATCH_DIM), patches.dtype), patches], axis=1)
    patches_flat = patches_p.reshape(B * SEQ, PATCH_DIM)

    # Additive term per image: pos + [cls ; patch-embed bias], tiled over BB.
    addv = params["pos"] + jnp.concatenate(
        [params["cls"], jnp.broadcast_to(params["bp"], (N_PATCHES, D))], axis=0)
    addv = jnp.tile(addv, (BB, 1)).astype(jnp.float32)          # (M, D)

    # Block-diagonal additive mask: attention never crosses images.
    img_id = jnp.arange(M) // SEQ
    maskb = jnp.where(img_id[:, None] == img_id[None, :],
                      0.0, MASK_NEG).astype(jnp.float32)        # (M, M)

    # Packed LayerNorm weights: [ln1_0, ln2_0, ln1_1, ln2_1, ..., lnh].
    ln_pairs = jnp.stack([params["ln1"][:, 0, :], params["ln2"][:, 0, :]],
                         axis=1).reshape(2 * L, D)
    ln_w = jnp.concatenate([ln_pairs, params["lnh"]], axis=0)   # (2L+1, D)

    # Packed attention weights per layer: [Wq | Wk | Wv | Wo] -> (L, D, 4D).
    w_attn = jnp.concatenate(
        [params["wq"], params["wk"], params["wv"], params["wo"]],
        axis=-1).astype(jnp.bfloat16)

    wp = params["wp"].astype(jnp.bfloat16)
    w1 = params["w1"].astype(jnp.bfloat16)
    w2 = params["w2"].astype(jnp.bfloat16)

    # Lane-dense head: pad the action dimension to OUT_PAD lanes.
    wh_pad = jnp.zeros((D, OUT_PAD), jnp.float32).at[:, :A].set(params["wh"])
    wh_pad = wh_pad.astype(jnp.bfloat16)
    bh_pad = jnp.zeros((1, OUT_PAD), jnp.float32).at[:, :A].set(params["bh"])

    def rep(shape):
        n = len(shape)
        return pl.BlockSpec(shape, lambda i, n=n: (0,) * n)

    out = pl.pallas_call(
        vit_kernel,
        out_shape=jax.ShapeDtypeStruct((B * SEQ, OUT_PAD), jnp.float32),
        grid_spec=pltpu.PrefetchScalarGridSpec(
            num_scalar_prefetch=0,
            grid=grid,
            in_specs=[
                pl.BlockSpec((M, PATCH_DIM), lambda i: (i, 0)),   # patches
                rep((PATCH_DIM, D)),                              # wp
                rep((M, D)),                                      # addv
                rep((M, M)),                                      # block-diag mask
                rep((2 * L + 1, D)),                              # LN weights
                rep((L, D, 4 * D)),                               # Wqkv|Wo
                rep((L, D, FFN_DIM)),                             # W1
                rep((L, FFN_DIM, D)),                             # W2
                rep((D, OUT_PAD)),                                # head W (padded)
                rep((1, OUT_PAD)),                                # head b (padded)
            ],
            out_specs=pl.BlockSpec((M, OUT_PAD), lambda i: (i, 0)),
        ),
        compiler_params=pltpu.CompilerParams(dimension_semantics=("parallel",)),
    )(patches_flat, wp, addv, maskb, ln_w, w_attn, w1, w2, wh_pad, bh_pad)

    # Row b*SEQ is the CLS position of image b; keep only the real action lanes.
    return out.reshape(B, SEQ, OUT_PAD)[:, 0, :A]


def vit_forward_reference(image, params):
    # pure-JAX f32 reference (standard multi-head formulation) for validation
    patches = image2patch(image, PATCH_SIZE)
    B = patches.shape[0]
    L, D, H, DH = N_LAYERS, EMBED_DIM, N_HEADS, HEAD_DIM

    def ln(v, w):
        mu = v.mean(-1, keepdims=True)
        vc = v - mu
        var = (vc * vc).mean(-1, keepdims=True)
        return vc * jax.lax.rsqrt(var + LN_EPS) * w

    x = patches @ params["wp"] + params["bp"]
    cls = jnp.broadcast_to(params["cls"][None], (B, 1, D))
    x = jnp.concatenate([cls, x], axis=1) + params["pos"][None]
    for l in range(L):
        h = ln(x, params["ln1"][l])
        q = (h @ params["wq"][l]).reshape(B, SEQ, H, DH).transpose(0, 2, 1, 3)
        k = (h @ params["wk"][l]).reshape(B, SEQ, H, DH).transpose(0, 2, 1, 3)
        v = (h @ params["wv"][l]).reshape(B, SEQ, H, DH).transpose(0, 2, 1, 3)
        s = jnp.einsum("bhqd,bhkd->bhqk", q, k) / math.sqrt(DH)
        p = jnp.exp(s - s.max(-1, keepdims=True))
        p = p / p.sum(-1, keepdims=True)
        o = jnp.einsum("bhqk,bhkd->bhqd", p, v).transpose(0, 2, 1, 3).reshape(B, SEQ, D)
        x = x + o @ params["wo"][l]
        h2 = ln(x, params["ln2"][l])
        x = x + jnp.maximum(h2 @ params["w1"][l], 0.0) @ params["w2"][l]
    cls_out = x[:, 0]
    return ln(cls_out, params["lnh"]) @ params["wh"] + params["bh"]


def init_params(key):
    ks = jax.random.split(key, 15)
    sc = 0.05
    n = lambda k, shape, s=sc: s * jax.random.normal(k, shape, jnp.float32)
    return {
        "wp":  n(ks[0], (PATCH_DIM, EMBED_DIM)),
        "bp":  n(ks[1], (1, EMBED_DIM)),
        "cls": n(ks[2], (1, EMBED_DIM), 1.0),                 # torch.randn
        "pos": n(ks[3], (SEQ, EMBED_DIM), 1.0),               # torch.randn
        "ln1": 1.0 + n(ks[4], (N_LAYERS, 1, EMBED_DIM)),
        "wq":  n(ks[5], (N_LAYERS, EMBED_DIM, EMBED_DIM)),
        "wk":  n(ks[6], (N_LAYERS, EMBED_DIM, EMBED_DIM)),
        "wv":  n(ks[7], (N_LAYERS, EMBED_DIM, EMBED_DIM)),
        "wo":  n(ks[8], (N_LAYERS, EMBED_DIM, EMBED_DIM)),
        "ln2": 1.0 + n(ks[9], (N_LAYERS, 1, EMBED_DIM)),
        "w1":  n(ks[10], (N_LAYERS, EMBED_DIM, FFN_DIM)),
        "w2":  n(ks[11], (N_LAYERS, FFN_DIM, EMBED_DIM)),
        "lnh": 1.0 + n(ks[12], (1, EMBED_DIM)),
        "wh":  n(ks[13], (EMBED_DIM, ACTION_SPACE)),
        "bh":  n(ks[14], (1, ACTION_SPACE)),
    }


if __name__ == "__main__":
    key = jax.random.PRNGKey(0)
    kp, kx = jax.random.split(key)
    params = init_params(kp)
    image = jax.random.normal(kx, (2, N_CHANNELS, IMAGE_SIZE, IMAGE_SIZE), jnp.float32)

    out = jax.block_until_ready(vit_forward_pallas(image, params))
    ref = jax.block_until_ready(vit_forward_reference(image, params))

    assert out.shape == (2, ACTION_SPACE), out.shape
    np.testing.assert_allclose(np.asarray(out), np.asarray(ref), rtol=2e-2, atol=2e-2)
    print("KERNEL_OK")
</pallas_src>

<mosaic_0001>
module attributes {stable_mosaic.version = 11 : i64} {
  func.func @vit_kernel(%arg0: i32, %arg1: memref<10x256xf32, #tpu.memory_space<vmem>>, %arg2: memref<256x32xbf16, #tpu.memory_space<vmem>>, %arg3: memref<10x32xf32, #tpu.memory_space<vmem>>, %arg4: memref<10x10xf32, #tpu.memory_space<vmem>>, %arg5: memref<5x32xf32, #tpu.memory_space<vmem>>, %arg6: memref<2x32x128xbf16, #tpu.memory_space<vmem>>, %arg7: memref<2x32x128xbf16, #tpu.memory_space<vmem>>, %arg8: memref<2x128x32xbf16, #tpu.memory_space<vmem>>, %arg9: memref<32x128xbf16, #tpu.memory_space<vmem>>, %arg10: memref<1x128xf32, #tpu.memory_space<vmem>>, %arg11: memref<10x128xf32, #tpu.memory_space<vmem>>) attributes {dimension_semantics = [#tpu.dimension_semantics<parallel>], iteration_bounds = array<i64: 1>, scalar_prefetch = 0 : i64, scratch_operands = 0 : i64, tpu.core_type = #tpu.core_type<tc>, window_params = [{transform_indices = @transform_0, window_bounds = array<i64: 10, 256>}, {pipeline_mode = #tpu.pipeline_mode<synchronous>, transform_indices = @transform_1, window_bounds = array<i64: 256, 32>}, {pipeline_mode = #tpu.pipeline_mode<synchronous>, transform_indices = @transform_2, window_bounds = array<i64: 10, 32>}, {pipeline_mode = #tpu.pipeline_mode<synchronous>, transform_indices = @transform_3, window_bounds = array<i64: 10, 10>}, {pipeline_mode = #tpu.pipeline_mode<synchronous>, transform_indices = @transform_4, window_bounds = array<i64: 5, 32>}, {pipeline_mode = #tpu.pipeline_mode<synchronous>, transform_indices = @transform_5, window_bounds = array<i64: 2, 32, 128>}, {pipeline_mode = #tpu.pipeline_mode<synchronous>, transform_indices = @transform_6, window_bounds = array<i64: 2, 32, 128>}, {pipeline_mode = #tpu.pipeline_mode<synchronous>, transform_indices = @transform_7, window_bounds = array<i64: 2, 128, 32>}, {pipeline_mode = #tpu.pipeline_mode<synchronous>, transform_indices = @transform_8, window_bounds = array<i64: 32, 128>}, {pipeline_mode = #tpu.pipeline_mode<synchronous>, transform_indices = @transform_9, window_bounds = array<i64: 1, 128>}, {transform_indices = @transform_10, window_bounds = array<i64: 10, 128>}]} {
    %c0 = arith.constant 0 : index
    %c0_0 = arith.constant 0 : index
    %0 = vector.load %arg1[%c0, %c0_0] : memref<10x256xf32, #tpu.memory_space<vmem>>, vector<10x256xf32>
    %1 = arith.truncf %0 : vector<10x256xf32> to vector<10x256xbf16>
    %c0_1 = arith.constant 0 : index
    %c0_2 = arith.constant 0 : index
    %2 = vector.load %arg2[%c0_1, %c0_2] : memref<256x32xbf16, #tpu.memory_space<vmem>>, vector<256x32xbf16>
    %cst = arith.constant dense<0.000000e+00> : vector<10x32xf32>
    %3 = tpu.matmul %1, %2, %cst {dimension_numbers = #tpu.dot_dimension_numbers<[1], [0], [0], [1], [0, 0, 1, 1], [], []>} : vector<10x256xbf16>, vector<256x32xbf16>, vector<10x32xf32> -> vector<10x32xf32>
    %c0_3 = arith.constant 0 : index
    %c0_4 = arith.constant 0 : index
    %4 = vector.load %arg3[%c0_3, %c0_4] : memref<10x32xf32, #tpu.memory_space<vmem>>, vector<10x32xf32>
    %5 = arith.addf %3, %4 : vector<10x32xf32>
    %c0_5 = arith.constant 0 : index
    %c0_6 = arith.constant 0 : index
    %6 = vector.load %arg4[%c0_5, %c0_6] : memref<10x10xf32, #tpu.memory_space<vmem>>, vector<10x10xf32>
    %c0_7 = arith.constant 0 : index
    %c0_8 = arith.constant 0 : index
    %7 = vector.load %arg5[%c0_7, %c0_8] : memref<5x32xf32, #tpu.memory_space<vmem>>, vector<1x32xf32>
    %cst_9 = arith.constant dense<0.000000e+00> : vector<10xf32>
    %8 = vector.multi_reduction <add>, %5, %cst_9 [1] : vector<10x32xf32> to vector<10xf32>
    %9 = vector.shape_cast %8 : vector<10xf32> to vector<10x1xf32>
    %cst_10 = arith.constant 3.200000e+01 : f32
    %10 = vector.broadcast %cst_10 : f32 to vector<10x1xf32>
    %11 = arith.divf %9, %10 : vector<10x1xf32>
    %12 = vector.broadcast %11 : vector<10x1xf32> to vector<10x32xf32>
    %13 = arith.subf %5, %12 : vector<10x32xf32>
    %14 = arith.mulf %13, %13 : vector<10x32xf32>
    %cst_11 = arith.constant dense<0.000000e+00> : vector<10xf32>
    %15 = vector.multi_reduction <add>, %14, %cst_11 [1] : vector<10x32xf32> to vector<10xf32>
    %16 = vector.shape_cast %15 : vector<10xf32> to vector<10x1xf32>
    %cst_12 = arith.constant 3.200000e+01 : f32
    %17 = vector.broadcast %cst_12 : f32 to vector<10x1xf32>
    %18 = arith.divf %16, %17 : vector<10x1xf32>
    %cst_13 = arith.constant 9.99999974E-6 : f32
    %19 = vector.broadcast %cst_13 : f32 to vector<10x1xf32>
    %20 = arith.addf %18, %19 : vector<10x1xf32>
    %21 = math.rsqrt %20 : vector<10x1xf32>
    %22 = vector.broadcast %21 : vector<10x1xf32> to vector<10x32xf32>
    %23 = arith.mulf %13, %22 : vector<10x32xf32>
    %24 = vector.broadcast %7 : vector<1x32xf32> to vector<10x32xf32>
    %25 = arith.mulf %23, %24 : vector<10x32xf32>
    %26 = arith.truncf %25 : vector<10x32xf32> to vector<10x32xbf16>
    %c0_14 = arith.constant 0 : index
    %c0_15 = arith.constant 0 : index
    %c0_16 = arith.constant 0 : index
    %27 = vector.load %arg6[%c0_14, %c0_15, %c0_16] : memref<2x32x128xbf16, #tpu.memory_space<vmem>>, vector<1x32x128xbf16>
    %28 = vector.shape_cast %27 : vector<1x32x128xbf16> to vector<32x128xbf16>
    %29 = vector.extract_strided_slice %28 {offsets = [0, 0], sizes = [32, 96], strides = [1, 1]} : vector<32x128xbf16> to vector<32x96xbf16>
    %cst_17 = arith.constant dense<0.000000e+00> : vector<10x96xf32>
    %30 = tpu.matmul %26, %29, %cst_17 {dimension_numbers = #tpu.dot_dimension_numbers<[1], [0], [0], [1], [0, 0, 1, 1], [], []>} : vector<10x32xbf16>, vector<32x96xbf16>, vector<10x96xf32> -> vector<10x96xf32>
    %31 = vector.extract_strided_slice %30 {offsets = [0, 0], sizes = [10, 8], strides = [1, 1]} : vector<10x96xf32> to vector<10x8xf32>
    %32 = arith.truncf %31 : vector<10x8xf32> to vector<10x8xbf16>
    %33 = vector.extract_strided_slice %30 {offsets = [0, 32], sizes = [10, 8], strides = [1, 1]} : vector<10x96xf32> to vector<10x8xf32>
    %34 = arith.truncf %33 : vector<10x8xf32> to vector<10x8xbf16>
    %35 = vector.extract_strided_slice %30 {offsets = [0, 64], sizes = [10, 8], strides = [1, 1]} : vector<10x96xf32> to vector<10x8xf32>
    %36 = arith.truncf %35 : vector<10x8xf32> to vector<10x8xbf16>
    %cst_18 = arith.constant dense<0.000000e+00> : vector<10x10xf32>
    %37 = tpu.matmul %32, %34, %cst_18 {dimension_numbers = #tpu.dot_dimension_numbers<[1], [1], [0], [0], [0, 0, 1, 0], [], []>} : vector<10x8xbf16>, vector<10x8xbf16>, vector<10x10xf32> -> vector<10x10xf32>
    %cst_19 = arith.constant 0.353553385 : f32
    %38 = vector.broadcast %cst_19 : f32 to vector<10x10xf32>
    %39 = arith.mulf %37, %38 : vector<10x10xf32>
    %40 = arith.addf %39, %6 : vector<10x10xf32>
    %cst_20 = arith.constant dense<0xFF800000> : vector<10xf32>
    %41 = vector.multi_reduction <maximumf>, %40, %cst_20 [1] : vector<10x10xf32> to vector<10xf32>
    %42 = vector.shape_cast %41 : vector<10xf32> to vector<10x1xf32>
    %43 = vector.broadcast %42 : vector<10x1xf32> to vector<10x10xf32>
    %44 = arith.subf %40, %43 : vector<10x10xf32>
    %45 = math.exp %44 : vector<10x10xf32>
    %cst_21 = arith.constant dense<0.000000e+00> : vector<10xf32>
    %46 = vector.multi_reduction <add>, %45, %cst_21 [1] : vector<10x10xf32> to vector<10xf32>
    %47 = vector.shape_cast %46 : vector<10xf32> to vector<10x1xf32>
    %48 = tpu.reciprocal %47 {approx = true} : vector<10x1xf32> -> vector<10x1xf32>
    %49 = vector.broadcast %48 : vector<10x1xf32> to vector<10x10xf32>
    %50 = arith.mulf %45, %49 : vector<10x10xf32>
    %51 = arith.truncf %50 : vector<10x10xf32> to vector<10x10xbf16>
    %cst_22 = arith.constant dense<0.000000e+00> : vector<10x8xf32>
    %52 = tpu.matmul %51, %36, %cst_22 {dimension_numbers = #tpu.dot_dimension_numbers<[1], [0], [0], [1], [0, 0, 1, 1], [], []>} : vector<10x10xbf16>, vector<10x8xbf16>, vector<10x8xf32> -> vector<10x8xf32>
    %53 = vector.extract_strided_slice %30 {offsets = [0, 8], sizes = [10, 8], strides = [1, 1]} : vector<10x96xf32> to vector<10x8xf32>
    %54 = arith.truncf %53 : vector<10x8xf32> to vector<10x8xbf16>
    %55 = vector.extract_strided_slice %30 {offsets = [0, 40], sizes = [10, 8], strides = [1, 1]} : vector<10x96xf32> to vector<10x8xf32>
    %56 = arith.truncf %55 : vector<10x8xf32> to vector<10x8xbf16>
    %57 = vector.extract_strided_slice %30 {offsets = [0, 72], sizes = [10, 8], strides = [1, 1]} : vector<10x96xf32> to vector<10x8xf32>
    %58 = arith.truncf %57 : vector<10x8xf32> to vector<10x8xbf16>
    %cst_23 = arith.constant dense<0.000000e+00> : vector<10x10xf32>
    %59 = tpu.matmul %54, %56, %cst_23 {dimension_numbers = #tpu.dot_dimension_numbers<[1], [1], [0], [0], [0, 0, 1, 0], [], []>} : vector<10x8xbf16>, vector<10x8xbf16>, vector<10x10xf32> -> vector<10x10xf32>
    %cst_24 = arith.constant 0.353553385 : f32
    %60 = vector.broadcast %cst_24 : f32 to vector<10x10xf32>
    %61 = arith.mulf %59, %60 : vector<10x10xf32>
    %62 = arith.addf %61, %6 : vector<10x10xf32>
    %cst_25 = arith.constant dense<0xFF800000> : vector<10xf32>
    %63 = vector.multi_reduction <maximumf>, %62, %cst_25 [1] : vector<10x10xf32> to vector<10xf32>
    %64 = vector.shape_cast %63 : vector<10xf32> to vector<10x1xf32>
    %65 = vector.broadcast %64 : vector<10x1xf32> to vector<10x10xf32>
    %66 = arith.subf %62, %65 : vector<10x10xf32>
    %67 = math.exp %66 : vector<10x10xf32>
    %cst_26 = arith.constant dense<0.000000e+00> : vector<10xf32>
    %68 = vector.multi_reduction <add>, %67, %cst_26 [1] : vector<10x10xf32> to vector<10xf32>
    %69 = vector.shape_cast %68 : vector<10xf32> to vector<10x1xf32>
    %70 = tpu.reciprocal %69 {approx = true} : vector<10x1xf32> -> vector<10x1xf32>
    %71 = vector.broadcast %70 : vector<10x1xf32> to vector<10x10xf32>
    %72 = arith.mulf %67, %71 : vector<10x10xf32>
    %73 = arith.truncf %72 : vector<10x10xf32> to vector<10x10xbf16>
    %cst_27 = arith.constant dense<0.000000e+00> : vector<10x8xf32>
    %74 = tpu.matmul %73, %58, %cst_27 {dimension_numbers = #tpu.dot_dimension_numbers<[1], [0], [0], [1], [0, 0, 1, 1], [], []>} : vector<10x10xbf16>, vector<10x8xbf16>, vector<10x8xf32> -> vector<10x8xf32>
    %75 = vector.extract_strided_slice %30 {offsets = [0, 16], sizes = [10, 8], strides = [1, 1]} : vector<10x96xf32> to vector<10x8xf32>
    %76 = arith.truncf %75 : vector<10x8xf32> to vector<10x8xbf16>
    %77 = vector.extract_strided_slice %30 {offsets = [0, 48], sizes = [10, 8], strides = [1, 1]} : vector<10x96xf32> to vector<10x8xf32>
    %78 = arith.truncf %77 : vector<10x8xf32> to vector<10x8xbf16>
    %79 = vector.extract_strided_slice %30 {offsets = [0, 80], sizes = [10, 8], strides = [1, 1]} : vector<10x96xf32> to vector<10x8xf32>
    %80 = arith.truncf %79 : vector<10x8xf32> to vector<10x8xbf16>
    %cst_28 = arith.constant dense<0.000000e+00> : vector<10x10xf32>
    %81 = tpu.matmul %76, %78, %cst_28 {dimension_numbers = #tpu.dot_dimension_numbers<[1], [1], [0], [0], [0, 0, 1, 0], [], []>} : vector<10x8xbf16>, vector<10x8xbf16>, vector<10x10xf32> -> vector<10x10xf32>
    %cst_29 = arith.constant 0.353553385 : f32
    %82 = vector.broadcast %cst_29 : f32 to vector<10x10xf32>
    %83 = arith.mulf %81, %82 : vector<10x10xf32>
    %84 = arith.addf %83, %6 : vector<10x10xf32>
    %cst_30 = arith.constant dense<0xFF800000> : vector<10xf32>
    %85 = vector.multi_reduction <maximumf>, %84, %cst_30 [1] : vector<10x10xf32> to vector<10xf32>
    %86 = vector.shape_cast %85 : vector<10xf32> to vector<10x1xf32>
    %87 = vector.broadcast %86 : vector<10x1xf32> to vector<10x10xf32>
    %88 = arith.subf %84, %87 : vector<10x10xf32>
    %89 = math.exp %88 : vector<10x10xf32>
    %cst_31 = arith.constant dense<0.000000e+00> : vector<10xf32>
    %90 = vector.multi_reduction <add>, %89, %cst_31 [1] : vector<10x10xf32> to vector<10xf32>
    %91 = vector.shape_cast %90 : vector<10xf32> to vector<10x1xf32>
    %92 = tpu.reciprocal %91 {approx = true} : vector<10x1xf32> -> vector<10x1xf32>
    %93 = vector.broadcast %92 : vector<10x1xf32> to vector<10x10xf32>
    %94 = arith.mulf %89, %93 : vector<10x10xf32>
    %95 = arith.truncf %94 : vector<10x10xf32> to vector<10x10xbf16>
    %cst_32 = arith.constant dense<0.000000e+00> : vector<10x8xf32>
    %96 = tpu.matmul %95, %80, %cst_32 {dimension_numbers = #tpu.dot_dimension_numbers<[1], [0], [0], [1], [0, 0, 1, 1], [], []>} : vector<10x10xbf16>, vector<10x8xbf16>, vector<10x8xf32> -> vector<10x8xf32>
    %97 = vector.extract_strided_slice %30 {offsets = [0, 24], sizes = [10, 8], strides = [1, 1]} : vector<10x96xf32> to vector<10x8xf32>
    %98 = arith.truncf %97 : vector<10x8xf32> to vector<10x8xbf16>
    %99 = vector.extract_strided_slice %30 {offsets = [0, 56], sizes = [10, 8], strides = [1, 1]} : vector<10x96xf32> to vector<10x8xf32>
    %100 = arith.truncf %99 : vector<10x8xf32> to vector<10x8xbf16>
    %101 = vector.extract_strided_slice %30 {offsets = [0, 88], sizes = [10, 8], strides = [1, 1]} : vector<10x96xf32> to vector<10x8xf32>
    %102 = arith.truncf %101 : vector<10x8xf32> to vector<10x8xbf16>
    %cst_33 = arith.constant dense<0.000000e+00> : vector<10x10xf32>
    %103 = tpu.matmul %98, %100, %cst_33 {dimension_numbers = #tpu.dot_dimension_numbers<[1], [1], [0], [0], [0, 0, 1, 0], [], []>} : vector<10x8xbf16>, vector<10x8xbf16>, vector<10x10xf32> -> vector<10x10xf32>
    %cst_34 = arith.constant 0.353553385 : f32
    %104 = vector.broadcast %cst_34 : f32 to vector<10x10xf32>
    %105 = arith.mulf %103, %104 : vector<10x10xf32>
    %106 = arith.addf %105, %6 : vector<10x10xf32>
    %cst_35 = arith.constant dense<0xFF800000> : vector<10xf32>
    %107 = vector.multi_reduction <maximumf>, %106, %cst_35 [1] : vector<10x10xf32> to vector<10xf32>
    %108 = vector.shape_cast %107 : vector<10xf32> to vector<10x1xf32>
    %109 = vector.broadcast %108 : vector<10x1xf32> to vector<10x10xf32>
    %110 = arith.subf %106, %109 : vector<10x10xf32>
    %111 = math.exp %110 : vector<10x10xf32>
    %cst_36 = arith.constant dense<0.000000e+00> : vector<10xf32>
    %112 = vector.multi_reduction <add>, %111, %cst_36 [1] : vector<10x10xf32> to vector<10xf32>
    %113 = vector.shape_cast %112 : vector<10xf32> to vector<10x1xf32>
    %114 = tpu.reciprocal %113 {approx = true} : vector<10x1xf32> -> vector<10x1xf32>
    %115 = vector.broadcast %114 : vector<10x1xf32> to vector<10x10xf32>
    %116 = arith.mulf %111, %115 : vector<10x10xf32>
    %117 = arith.truncf %116 : vector<10x10xf32> to vector<10x10xbf16>
    %cst_37 = arith.constant dense<0.000000e+00> : vector<10x8xf32>
    %118 = tpu.matmul %117, %102, %cst_37 {dimension_numbers = #tpu.dot_dimension_numbers<[1], [0], [0], [1], [0, 0, 1, 1], [], []>} : vector<10x10xbf16>, vector<10x8xbf16>, vector<10x8xf32> -> vector<10x8xf32>
    %119 = tpu.concatenate %52, %74, %96, %118 in 1 : vector<10x8xf32>, vector<10x8xf32>, vector<10x8xf32>, vector<10x8xf32> -> vector<10x32xf32>
    %120 = arith.truncf %119 : vector<10x32xf32> to vector<10x32xbf16>
    %121 = vector.extract_strided_slice %28 {offsets = [0, 96], sizes = [32, 32], strides = [1, 1]} : vector<32x128xbf16> to vector<32x32xbf16>
    %cst_38 = arith.constant dense<0.000000e+00> : vector<10x32xf32>
    %122 = tpu.matmul %120, %121, %cst_38 {dimension_numbers = #tpu.dot_dimension_numbers<[1], [0], [0], [1], [0, 0, 1, 1], [], []>} : vector<10x32xbf16>, vector<32x32xbf16>, vector<10x32xf32> -> vector<10x32xf32>
    %123 = arith.addf %5, %122 : vector<10x32xf32>
    %c1 = arith.constant 1 : index
    %c0_39 = arith.constant 0 : index
    %124 = vector.load %arg5[%c1, %c0_39] : memref<5x32xf32, #tpu.memory_space<vmem>>, vector<1x32xf32>
    %cst_40 = arith.constant dense<0.000000e+00> : vector<10xf32>
    %125 = vector.multi_reduction <add>, %123, %cst_40 [1] : vector<10x32xf32> to vector<10xf32>
    %126 = vector.shape_cast %125 : vector<10xf32> to vector<10x1xf32>
    %cst_41 = arith.constant 3.200000e+01 : f32
    %127 = vector.broadcast %cst_41 : f32 to vector<10x1xf32>
    %128 = arith.divf %126, %127 : vector<10x1xf32>
    %129 = vector.broadcast %128 : vector<10x1xf32> to vector<10x32xf32>
    %130 = arith.subf %123, %129 : vector<10x32xf32>
    %131 = arith.mulf %130, %130 : vector<10x32xf32>
    %cst_42 = arith.constant dense<0.000000e+00> : vector<10xf32>
    %132 = vector.multi_reduction <add>, %131, %cst_42 [1] : vector<10x32xf32> to vector<10xf32>
    %133 = vector.shape_cast %132 : vector<10xf32> to vector<10x1xf32>
    %cst_43 = arith.constant 3.200000e+01 : f32
    %134 = vector.broadcast %cst_43 : f32 to vector<10x1xf32>
    %135 = arith.divf %133, %134 : vector<10x1xf32>
    %cst_44 = arith.constant 9.99999974E-6 : f32
    %136 = vector.broadcast %cst_44 : f32 to vector<10x1xf32>
    %137 = arith.addf %135, %136 : vector<10x1xf32>
    %138 = math.rsqrt %137 : vector<10x1xf32>
    %139 = vector.broadcast %138 : vector<10x1xf32> to vector<10x32xf32>
    %140 = arith.mulf %130, %139 : vector<10x32xf32>
    %141 = vector.broadcast %124 : vector<1x32xf32> to vector<10x32xf32>
    %142 = arith.mulf %140, %141 : vector<10x32xf32>
    %143 = arith.truncf %142 : vector<10x32xf32> to vector<10x32xbf16>
    %c0_45 = arith.constant 0 : index
    %c0_46 = arith.constant 0 : index
    %c0_47 = arith.constant 0 : index
    %144 = vector.load %arg7[%c0_45, %c0_46, %c0_47] : memref<2x32x128xbf16, #tpu.memory_space<vmem>>, vector<1x32x128xbf16>
    %145 = vector.shape_cast %144 : vector<1x32x128xbf16> to vector<32x128xbf16>
    %cst_48 = arith.constant dense<0.000000e+00> : vector<10x128xf32>
    %146 = tpu.matmul %143, %145, %cst_48 {dimension_numbers = #tpu.dot_dimension_numbers<[1], [0], [0], [1], [0, 0, 1, 1], [], []>} : vector<10x32xbf16>, vector<32x128xbf16>, vector<10x128xf32> -> vector<10x128xf32>
    %cst_49 = arith.constant 0.000000e+00 : f32
    %147 = vector.broadcast %cst_49 : f32 to vector<10x128xf32>
    %148 = arith.maximumf %146, %147 : vector<10x128xf32>
    %149 = arith.truncf %148 : vector<10x128xf32> to vector<10x128xbf16>
    %c0_50 = arith.constant 0 : index
    %c0_51 = arith.constant 0 : index
    %c0_52 = arith.constant 0 : index
    %150 = vector.load %arg8[%c0_50, %c0_51, %c0_52] : memref<2x128x32xbf16, #tpu.memory_space<vmem>>, vector<1x128x32xbf16>
    %151 = vector.shape_cast %150 : vector<1x128x32xbf16> to vector<128x32xbf16>
    %cst_53 = arith.constant dense<0.000000e+00> : vector<10x32xf32>
    %152 = tpu.matmul %149, %151, %cst_53 {dimension_numbers = #tpu.dot_dimension_numbers<[1], [0], [0], [1], [0, 0, 1, 1], [], []>} : vector<10x128xbf16>, vector<128x32xbf16>, vector<10x32xf32> -> vector<10x32xf32>
    %153 = arith.addf %123, %152 : vector<10x32xf32>
    %c2 = arith.constant 2 : index
    %c0_54 = arith.constant 0 : index
    %154 = vector.load %arg5[%c2, %c0_54] : memref<5x32xf32, #tpu.memory_space<vmem>>, vector<1x32xf32>
    %cst_55 = arith.constant dense<0.000000e+00> : vector<10xf32>
    %155 = vector.multi_reduction <add>, %153, %cst_55 [1] : vector<10x32xf32> to vector<10xf32>
    %156 = vector.shape_cast %155 : vector<10xf32> to vector<10x1xf32>
    %cst_56 = arith.constant 3.200000e+01 : f32
    %157 = vector.broadcast %cst_56 : f32 to vector<10x1xf32>
    %158 = arith.divf %156, %157 : vector<10x1xf32>
    %159 = vector.broadcast %158 : vector<10x1xf32> to vector<10x32xf32>
    %160 = arith.subf %153, %159 : vector<10x32xf32>
    %161 = arith.mulf %160, %160 : vector<10x32xf32>
    %cst_57 = arith.constant dense<0.000000e+00> : vector<10xf32>
    %162 = vector.multi_reduction <add>, %161, %cst_57 [1] : vector<10x32xf32> to vector<10xf32>
    %163 = vector.shape_cast %162 : vector<10xf32> to vector<10x1xf32>
    %cst_58 = arith.constant 3.200000e+01 : f32
    %164 = vector.broadcast %cst_58 : f32 to vector<10x1xf32>
    %165 = arith.divf %163, %164 : vector<10x1xf32>
    %cst_59 = arith.constant 9.99999974E-6 : f32
    %166 = vector.broadcast %cst_59 : f32 to vector<10x1xf32>
    %167 = arith.addf %165, %166 : vector<10x1xf32>
    %168 = math.rsqrt %167 : vector<10x1xf32>
    %169 = vector.broadcast %168 : vector<10x1xf32> to vector<10x32xf32>
    %170 = arith.mulf %160, %169 : vector<10x32xf32>
    %171 = vector.broadcast %154 : vector<1x32xf32> to vector<10x32xf32>
    %172 = arith.mulf %170, %171 : vector<10x32xf32>
    %173 = arith.truncf %172 : vector<10x32xf32> to vector<10x32xbf16>
    %c1_60 = arith.constant 1 : index
    %c0_61 = arith.constant 0 : index
    %c0_62 = arith.constant 0 : index
    %174 = vector.load %arg6[%c1_60, %c0_61, %c0_62] : memref<2x32x128xbf16, #tpu.memory_space<vmem>>, vector<1x32x128xbf16>
    %175 = vector.shape_cast %174 : vector<1x32x128xbf16> to vector<32x128xbf16>
    %176 = vector.extract_strided_slice %175 {offsets = [0, 0], sizes = [32, 96], strides = [1, 1]} : vector<32x128xbf16> to vector<32x96xbf16>
    %cst_63 = arith.constant dense<0.000000e+00> : vector<10x96xf32>
    %177 = tpu.matmul %173, %176, %cst_63 {dimension_numbers = #tpu.dot_dimension_numbers<[1], [0], [0], [1], [0, 0, 1, 1], [], []>} : vector<10x32xbf16>, vector<32x96xbf16>, vector<10x96xf32> -> vector<10x96xf32>
    %178 = vector.extract_strided_slice %177 {offsets = [0, 0], sizes = [10, 8], strides = [1, 1]} : vector<10x96xf32> to vector<10x8xf32>
    %179 = arith.truncf %178 : vector<10x8xf32> to vector<10x8xbf16>
    %180 = vector.extract_strided_slice %177 {offsets = [0, 32], sizes = [10, 8], strides = [1, 1]} : vector<10x96xf32> to vector<10x8xf32>
    %181 = arith.truncf %180 : vector<10x8xf32> to vector<10x8xbf16>
    %182 = vector.extract_strided_slice %177 {offsets = [0, 64], sizes = [10, 8], strides = [1, 1]} : vector<10x96xf32> to vector<10x8xf32>
    %183 = arith.truncf %182 : vector<10x8xf32> to vector<10x8xbf16>
    %cst_64 = arith.constant dense<0.000000e+00> : vector<10x10xf32>
    %184 = tpu.matmul %179, %181, %cst_64 {dimension_numbers = #tpu.dot_dimension_numbers<[1], [1], [0], [0], [0, 0, 1, 0], [], []>} : vector<10x8xbf16>, vector<10x8xbf16>, vector<10x10xf32> -> vector<10x10xf32>
    %cst_65 = arith.constant 0.353553385 : f32
    %185 = vector.broadcast %cst_65 : f32 to vector<10x10xf32>
    %186 = arith.mulf %184, %185 : vector<10x10xf32>
    %187 = arith.addf %186, %6 : vector<10x10xf32>
    %cst_66 = arith.constant dense<0xFF800000> : vector<10xf32>
    %188 = vector.multi_reduction <maximumf>, %187, %cst_66 [1] : vector<10x10xf32> to vector<10xf32>
    %189 = vector.shape_cast %188 : vector<10xf32> to vector<10x1xf32>
    %190 = vector.broadcast %189 : vector<10x1xf32> to vector<10x10xf32>
    %191 = arith.subf %187, %190 : vector<10x10xf32>
    %192 = math.exp %191 : vector<10x10xf32>
    %cst_67 = arith.constant dense<0.000000e+00> : vector<10xf32>
    %193 = vector.multi_reduction <add>, %192, %cst_67 [1] : vector<10x10xf32> to vector<10xf32>
    %194 = vector.shape_cast %193 : vector<10xf32> to vector<10x1xf32>
    %195 = tpu.reciprocal %194 {approx = true} : vector<10x1xf32> -> vector<10x1xf32>
    %196 = vector.broadcast %195 : vector<10x1xf32> to vector<10x10xf32>
    %197 = arith.mulf %192, %196 : vector<10x10xf32>
    %198 = arith.truncf %197 : vector<10x10xf32> to vector<10x10xbf16>
    %cst_68 = arith.constant dense<0.000000e+00> : vector<10x8xf32>
    %199 = tpu.matmul %198, %183, %cst_68 {dimension_numbers = #tpu.dot_dimension_numbers<[1], [0], [0], [1], [0, 0, 1, 1], [], []>} : vector<10x10xbf16>, vector<10x8xbf16>, vector<10x8xf32> -> vector<10x8xf32>
    %200 = vector.extract_strided_slice %177 {offsets = [0, 8], sizes = [10, 8], strides = [1, 1]} : vector<10x96xf32> to vector<10x8xf32>
    %201 = arith.truncf %200 : vector<10x8xf32> to vector<10x8xbf16>
    %202 = vector.extract_strided_slice %177 {offsets = [0, 40], sizes = [10, 8], strides = [1, 1]} : vector<10x96xf32> to vector<10x8xf32>
    %203 = arith.truncf %202 : vector<10x8xf32> to vector<10x8xbf16>
    %204 = vector.extract_strided_slice %177 {offsets = [0, 72], sizes = [10, 8], strides = [1, 1]} : vector<10x96xf32> to vector<10x8xf32>
    %205 = arith.truncf %204 : vector<10x8xf32> to vector<10x8xbf16>
    %cst_69 = arith.constant dense<0.000000e+00> : vector<10x10xf32>
    %206 = tpu.matmul %201, %203, %cst_69 {dimension_numbers = #tpu.dot_dimension_numbers<[1], [1], [0], [0], [0, 0, 1, 0], [], []>} : vector<10x8xbf16>, vector<10x8xbf16>, vector<10x10xf32> -> vector<10x10xf32>
    %cst_70 = arith.constant 0.353553385 : f32
    %207 = vector.broadcast %cst_70 : f32 to vector<10x10xf32>
    %208 = arith.mulf %206, %207 : vector<10x10xf32>
    %209 = arith.addf %208, %6 : vector<10x10xf32>
    %cst_71 = arith.constant dense<0xFF800000> : vector<10xf32>
    %210 = vector.multi_reduction <maximumf>, %209, %cst_71 [1] : vector<10x10xf32> to vector<10xf32>
    %211 = vector.shape_cast %210 : vector<10xf32> to vector<10x1xf32>
    %212 = vector.broadcast %211 : vector<10x1xf32> to vector<10x10xf32>
    %213 = arith.subf %209, %212 : vector<10x10xf32>
    %214 = math.exp %213 : vector<10x10xf32>
    %cst_72 = arith.constant dense<0.000000e+00> : vector<10xf32>
    %215 = vector.multi_reduction <add>, %214, %cst_72 [1] : vector<10x10xf32> to vector<10xf32>
    %216 = vector.shape_cast %215 : vector<10xf32> to vector<10x1xf32>
    %217 = tpu.reciprocal %216 {approx = true} : vector<10x1xf32> -> vector<10x1xf32>
    %218 = vector.broadcast %217 : vector<10x1xf32> to vector<10x10xf32>
    %219 = arith.mulf %214, %218 : vector<10x10xf32>
    %220 = arith.truncf %219 : vector<10x10xf32> to vector<10x10xbf16>
    %cst_73 = arith.constant dense<0.000000e+00> : vector<10x8xf32>
    %221 = tpu.matmul %220, %205, %cst_73 {dimension_numbers = #tpu.dot_dimension_numbers<[1], [0], [0], [1], [0, 0, 1, 1], [], []>} : vector<10x10xbf16>, vector<10x8xbf16>, vector<10x8xf32> -> vector<10x8xf32>
    %222 = vector.extract_strided_slice %177 {offsets = [0, 16], sizes = [10, 8], strides = [1, 1]} : vector<10x96xf32> to vector<10x8xf32>
    %223 = arith.truncf %222 : vector<10x8xf32> to vector<10x8xbf16>
    %224 = vector.extract_strided_slice %177 {offsets = [0, 48], sizes = [10, 8], strides = [1, 1]} : vector<10x96xf32> to vector<10x8xf32>
    %225 = arith.truncf %224 : vector<10x8xf32> to vector<10x8xbf16>
    %226 = vector.extract_strided_slice %177 {offsets = [0, 80], sizes = [10, 8], strides = [1, 1]} : vector<10x96xf32> to vector<10x8xf32>
    %227 = arith.truncf %226 : vector<10x8xf32> to vector<10x8xbf16>
    %cst_74 = arith.constant dense<0.000000e+00> : vector<10x10xf32>
    %228 = tpu.matmul %223, %225, %cst_74 {dimension_numbers = #tpu.dot_dimension_numbers<[1], [1], [0], [0], [0, 0, 1, 0], [], []>} : vector<10x8xbf16>, vector<10x8xbf16>, vector<10x10xf32> -> vector<10x10xf32>
    %cst_75 = arith.constant 0.353553385 : f32
    %229 = vector.broadcast %cst_75 : f32 to vector<10x10xf32>
    %230 = arith.mulf %228, %229 : vector<10x10xf32>
    %231 = arith.addf %230, %6 : vector<10x10xf32>
    %cst_76 = arith.constant dense<0xFF800000> : vector<10xf32>
    %232 = vector.multi_reduction <maximumf>, %231, %cst_76 [1] : vector<10x10xf32> to vector<10xf32>
    %233 = vector.shape_cast %232 : vector<10xf32> to vector<10x1xf32>
    %234 = vector.broadcast %233 : vector<10x1xf32> to vector<10x10xf32>
    %235 = arith.subf %231, %234 : vector<10x10xf32>
    %236 = math.exp %235 : vector<10x10xf32>
    %cst_77 = arith.constant dense<0.000000e+00> : vector<10xf32>
    %237 = vector.multi_reduction <add>, %236, %cst_77 [1] : vector<10x10xf32> to vector<10xf32>
    %238 = vector.shape_cast %237 : vector<10xf32> to vector<10x1xf32>
    %239 = tpu.reciprocal %238 {approx = true} : vector<10x1xf32> -> vector<10x1xf32>
    %240 = vector.broadcast %239 : vector<10x1xf32> to vector<10x10xf32>
    %241 = arith.mulf %236, %240 : vector<10x10xf32>
    %242 = arith.truncf %241 : vector<10x10xf32> to vector<10x10xbf16>
    %cst_78 = arith.constant dense<0.000000e+00> : vector<10x8xf32>
    %243 = tpu.matmul %242, %227, %cst_78 {dimension_numbers = #tpu.dot_dimension_numbers<[1], [0], [0], [1], [0, 0, 1, 1], [], []>} : vector<10x10xbf16>, vector<10x8xbf16>, vector<10x8xf32> -> vector<10x8xf32>
    %244 = vector.extract_strided_slice %177 {offsets = [0, 24], sizes = [10, 8], strides = [1, 1]} : vector<10x96xf32> to vector<10x8xf32>
    %245 = arith.truncf %244 : vector<10x8xf32> to vector<10x8xbf16>
    %246 = vector.extract_strided_slice %177 {offsets = [0, 56], sizes = [10, 8], strides = [1, 1]} : vector<10x96xf32> to vector<10x8xf32>
    %247 = arith.truncf %246 : vector<10x8xf32> to vector<10x8xbf16>
    %248 = vector.extract_strided_slice %177 {offsets = [0, 88], sizes = [10, 8], strides = [1, 1]} : vector<10x96xf32> to vector<10x8xf32>
    %249 = arith.truncf %248 : vector<10x8xf32> to vector<10x8xbf16>
    %cst_79 = arith.constant dense<0.000000e+00> : vector<10x10xf32>
    %250 = tpu.matmul %245, %247, %cst_79 {dimension_numbers = #tpu.dot_dimension_numbers<[1], [1], [0], [0], [0, 0, 1, 0], [], []>} : vector<10x8xbf16>, vector<10x8xbf16>, vector<10x10xf32> -> vector<10x10xf32>
    %cst_80 = arith.constant 0.353553385 : f32
    %251 = vector.broadcast %cst_80 : f32 to vector<10x10xf32>
    %252 = arith.mulf %250, %251 : vector<10x10xf32>
    %253 = arith.addf %252, %6 : vector<10x10xf32>
    %cst_81 = arith.constant dense<0xFF800000> : vector<10xf32>
    %254 = vector.multi_reduction <maximumf>, %253, %cst_81 [1] : vector<10x10xf32> to vector<10xf32>
    %255 = vector.shape_cast %254 : vector<10xf32> to vector<10x1xf32>
    %256 = vector.broadcast %255 : vector<10x1xf32> to vector<10x10xf32>
    %257 = arith.subf %253, %256 : vector<10x10xf32>
    %258 = math.exp %257 : vector<10x10xf32>
    %cst_82 = arith.constant dense<0.000000e+00> : vector<10xf32>
    %259 = vector.multi_reduction <add>, %258, %cst_82 [1] : vector<10x10xf32> to vector<10xf32>
    %260 = vector.shape_cast %259 : vector<10xf32> to vector<10x1xf32>
    %261 = tpu.reciprocal %260 {approx = true} : vector<10x1xf32> -> vector<10x1xf32>
    %262 = vector.broadcast %261 : vector<10x1xf32> to vector<10x10xf32>
    %263 = arith.mulf %258, %262 : vector<10x10xf32>
    %264 = arith.truncf %263 : vector<10x10xf32> to vector<10x10xbf16>
    %cst_83 = arith.constant dense<0.000000e+00> : vector<10x8xf32>
    %265 = tpu.matmul %264, %249, %cst_83 {dimension_numbers = #tpu.dot_dimension_numbers<[1], [0], [0], [1], [0, 0, 1, 1], [], []>} : vector<10x10xbf16>, vector<10x8xbf16>, vector<10x8xf32> -> vector<10x8xf32>
    %266 = tpu.concatenate %199, %221, %243, %265 in 1 : vector<10x8xf32>, vector<10x8xf32>, vector<10x8xf32>, vector<10x8xf32> -> vector<10x32xf32>
    %267 = arith.truncf %266 : vector<10x32xf32> to vector<10x32xbf16>
    %268 = vector.extract_strided_slice %175 {offsets = [0, 96], sizes = [32, 32], strides = [1, 1]} : vector<32x128xbf16> to vector<32x32xbf16>
    %cst_84 = arith.constant dense<0.000000e+00> : vector<10x32xf32>
    %269 = tpu.matmul %267, %268, %cst_84 {dimension_numbers = #tpu.dot_dimension_numbers<[1], [0], [0], [1], [0, 0, 1, 1], [], []>} : vector<10x32xbf16>, vector<32x32xbf16>, vector<10x32xf32> -> vector<10x32xf32>
    %270 = arith.addf %153, %269 : vector<10x32xf32>
    %c3 = arith.constant 3 : index
    %c0_85 = arith.constant 0 : index
    %271 = vector.load %arg5[%c3, %c0_85] : memref<5x32xf32, #tpu.memory_space<vmem>>, vector<1x32xf32>
    %cst_86 = arith.constant dense<0.000000e+00> : vector<10xf32>
    %272 = vector.multi_reduction <add>, %270, %cst_86 [1] : vector<10x32xf32> to vector<10xf32>
    %273 = vector.shape_cast %272 : vector<10xf32> to vector<10x1xf32>
    %cst_87 = arith.constant 3.200000e+01 : f32
    %274 = vector.broadcast %cst_87 : f32 to vector<10x1xf32>
    %275 = arith.divf %273, %274 : vector<10x1xf32>
    %276 = vector.broadcast %275 : vector<10x1xf32> to vector<10x32xf32>
    %277 = arith.subf %270, %276 : vector<10x32xf32>
    %278 = arith.mulf %277, %277 : vector<10x32xf32>
    %cst_88 = arith.constant dense<0.000000e+00> : vector<10xf32>
    %279 = vector.multi_reduction <add>, %278, %cst_88 [1] : vector<10x32xf32> to vector<10xf32>
    %280 = vector.shape_cast %279 : vector<10xf32> to vector<10x1xf32>
    %cst_89 = arith.constant 3.200000e+01 : f32
    %281 = vector.broadcast %cst_89 : f32 to vector<10x1xf32>
    %282 = arith.divf %280, %281 : vector<10x1xf32>
    %cst_90 = arith.constant 9.99999974E-6 : f32
    %283 = vector.broadcast %cst_90 : f32 to vector<10x1xf32>
    %284 = arith.addf %282, %283 : vector<10x1xf32>
    %285 = math.rsqrt %284 : vector<10x1xf32>
    %286 = vector.broadcast %285 : vector<10x1xf32> to vector<10x32xf32>
    %287 = arith.mulf %277, %286 : vector<10x32xf32>
    %288 = vector.broadcast %271 : vector<1x32xf32> to vector<10x32xf32>
    %289 = arith.mulf %287, %288 : vector<10x32xf32>
    %290 = arith.truncf %289 : vector<10x32xf32> to vector<10x32xbf16>
    %c1_91 = arith.constant 1 : index
    %c0_92 = arith.constant 0 : index
    %c0_93 = arith.constant 0 : index
    %291 = vector.load %arg7[%c1_91, %c0_92, %c0_93] : memref<2x32x128xbf16, #tpu.memory_space<vmem>>, vector<1x32x128xbf16>
    %292 = vector.shape_cast %291 : vector<1x32x128xbf16> to vector<32x128xbf16>
    %cst_94 = arith.constant dense<0.000000e+00> : vector<10x128xf32>
    %293 = tpu.matmul %290, %292, %cst_94 {dimension_numbers = #tpu.dot_dimension_numbers<[1], [0], [0], [1], [0, 0, 1, 1], [], []>} : vector<10x32xbf16>, vector<32x128xbf16>, vector<10x128xf32> -> vector<10x128xf32>
    %cst_95 = arith.constant 0.000000e+00 : f32
    %294 = vector.broadcast %cst_95 : f32 to vector<10x128xf32>
    %295 = arith.maximumf %293, %294 : vector<10x128xf32>
    %296 = arith.truncf %295 : vector<10x128xf32> to vector<10x128xbf16>
    %c1_96 = arith.constant 1 : index
    %c0_97 = arith.constant 0 : index
    %c0_98 = arith.constant 0 : index
    %297 = vector.load %arg8[%c1_96, %c0_97, %c0_98] : memref<2x128x32xbf16, #tpu.memory_space<vmem>>, vector<1x128x32xbf16>
    %298 = vector.shape_cast %297 : vector<1x128x32xbf16> to vector<128x32xbf16>
    %cst_99 = arith.constant dense<0.000000e+00> : vector<10x32xf32>
    %299 = tpu.matmul %296, %298, %cst_99 {dimension_numbers = #tpu.dot_dimension_numbers<[1], [0], [0], [1], [0, 0, 1, 1], [], []>} : vector<10x128xbf16>, vector<128x32xbf16>, vector<10x32xf32> -> vector<10x32xf32>
    %300 = arith.addf %270, %299 : vector<10x32xf32>
    %c4 = arith.constant 4 : index
    %c0_100 = arith.constant 0 : index
    %301 = vector.load %arg5[%c4, %c0_100] : memref<5x32xf32, #tpu.memory_space<vmem>>, vector<1x32xf32>
    %cst_101 = arith.constant dense<0.000000e+00> : vector<10xf32>
    %302 = vector.multi_reduction <add>, %300, %cst_101 [1] : vector<10x32xf32> to vector<10xf32>
    %303 = vector.shape_cast %302 : vector<10xf32> to vector<10x1xf32>
    %cst_102 = arith.constant 3.200000e+01 : f32
    %304 = vector.broadcast %cst_102 : f32 to vector<10x1xf32>
    %305 = arith.divf %303, %304 : vector<10x1xf32>
    %306 = vector.broadcast %305 : vector<10x1xf32> to vector<10x32xf32>
    %307 = arith.subf %300, %306 : vector<10x32xf32>
    %308 = arith.mulf %307, %307 : vector<10x32xf32>
    %cst_103 = arith.constant dense<0.000000e+00> : vector<10xf32>
    %309 = vector.multi_reduction <add>, %308, %cst_103 [1] : vector<10x32xf32> to vector<10xf32>
    %310 = vector.shape_cast %309 : vector<10xf32> to vector<10x1xf32>
    %cst_104 = arith.constant 3.200000e+01 : f32
    %311 = vector.broadcast %cst_104 : f32 to vector<10x1xf32>
    %312 = arith.divf %310, %311 : vector<10x1xf32>
    %cst_105 = arith.constant 9.99999974E-6 : f32
    %313 = vector.broadcast %cst_105 : f32 to vector<10x1xf32>
    %314 = arith.addf %312, %313 : vector<10x1xf32>
    %315 = math.rsqrt %314 : vector<10x1xf32>
    %316 = vector.broadcast %315 : vector<10x1xf32> to vector<10x32xf32>
    %317 = arith.mulf %307, %316 : vector<10x32xf32>
    %318 = vector.broadcast %301 : vector<1x32xf32> to vector<10x32xf32>
    %319 = arith.mulf %317, %318 : vector<10x32xf32>
    %320 = arith.truncf %319 : vector<10x32xf32> to vector<10x32xbf16>
    %c0_106 = arith.constant 0 : index
    %c0_107 = arith.constant 0 : index
    %321 = vector.load %arg9[%c0_106, %c0_107] : memref<32x128xbf16, #tpu.memory_space<vmem>>, vector<32x128xbf16>
    %cst_108 = arith.constant dense<0.000000e+00> : vector<10x128xf32>
    %322 = tpu.matmul %320, %321, %cst_108 {dimension_numbers = #tpu.dot_dimension_numbers<[1], [0], [0], [1], [0, 0, 1, 1], [], []>} : vector<10x32xbf16>, vector<32x128xbf16>, vector<10x128xf32> -> vector<10x128xf32>
    %c0_109 = arith.constant 0 : index
    %c0_110 = arith.constant 0 : index
    %323 = vector.load %arg10[%c0_109, %c0_110] : memref<1x128xf32, #tpu.memory_space<vmem>>, vector<1x128xf32>
    %324 = vector.broadcast %323 : vector<1x128xf32> to vector<10x128xf32>
    %325 = arith.addf %322, %324 : vector<10x128xf32>
    %c0_111 = arith.constant 0 : index
    %c0_112 = arith.constant 0 : index
    %326 = vector.load %arg11[%c0_111, %c0_112] : memref<10x128xf32, #tpu.memory_space<vmem>>, vector<10x128xf32>
    tpu.vector_store %arg11[%c0_111, %c0_112], %325 {strides = array<i32>} : memref<10x128xf32, #tpu.memory_space<vmem>>, vector<10x128xf32>,
    return
  }
  func.func @transform_0(%arg0: i32) -> (i32, i32) {
    %c0_i32 = arith.constant 0 : i32
    %c0_i32_0 = arith.constant 0 : i32
    return %arg0, %c0_i32 : i32, i32
  }
  func.func @transform_1(%arg0: i32) -> (i32, i32) {
    %c0_i32 = arith.constant 0 : i32
    %c0_i32_0 = arith.constant 0 : i32
    %c0_i32_1 = arith.constant 0 : i32
    return %c0_i32, %c0_i32_0 : i32, i32
  }
  func.func @transform_2(%arg0: i32) -> (i32, i32) {
    %c0_i32 = arith.constant 0 : i32
    %c0_i32_0 = arith.constant 0 : i32
    %c0_i32_1 = arith.constant 0 : i32
    return %c0_i32, %c0_i32_0 : i32, i32
  }
  func.func @transform_3(%arg0: i32) -> (i32, i32) {
    %c0_i32 = arith.constant 0 : i32
    %c0_i32_0 = arith.constant 0 : i32
    %c0_i32_1 = arith.constant 0 : i32
    return %c0_i32, %c0_i32_0 : i32, i32
  }
  func.func @transform_4(%arg0: i32) -> (i32, i32) {
    %c0_i32 = arith.constant 0 : i32
    %c0_i32_0 = arith.constant 0 : i32
    %c0_i32_1 = arith.constant 0 : i32
    return %c0_i32, %c0_i32_0 : i32, i32
  }
  func.func @transform_5(%arg0: i32) -> (i32, i32, i32) {
    %c0_i32 = arith.constant 0 : i32
    %c0_i32_0 = arith.constant 0 : i32
    %c0_i32_1 = arith.constant 0 : i32
    %c0_i32_2 = arith.constant 0 : i32
    return %c0_i32, %c0_i32_0, %c0_i32_1 : i32, i32, i32
  }
  func.func @transform_6(%arg0: i32) -> (i32, i32, i32) {
    %c0_i32 = arith.constant 0 : i32
    %c0_i32_0 = arith.constant 0 : i32
    %c0_i32_1 = arith.constant 0 : i32
    %c0_i32_2 = arith.constant 0 : i32
    return %c0_i32, %c0_i32_0, %c0_i32_1 : i32, i32, i32
  }
  func.func @transform_7(%arg0: i32) -> (i32, i32, i32) {
    %c0_i32 = arith.constant 0 : i32
    %c0_i32_0 = arith.constant 0 : i32
    %c0_i32_1 = arith.constant 0 : i32
    %c0_i32_2 = arith.constant 0 : i32
    return %c0_i32, %c0_i32_0, %c0_i32_1 : i32, i32, i32
  }
  func.func @transform_8(%arg0: i32) -> (i32, i32) {
    %c0_i32 = arith.constant 0 : i32
    %c0_i32_0 = arith.constant 0 : i32
    %c0_i32_1 = arith.constant 0 : i32
    return %c0_i32, %c0_i32_0 : i32, i32
  }
  func.func @transform_9(%arg0: i32) -> (i32, i32) {
    %c0_i32 = arith.constant 0 : i32
    %c0_i32_0 = arith.constant 0 : i32
    %c0_i32_1 = arith.constant 0 : i32
    return %c0_i32, %c0_i32_0 : i32, i32
  }
  func.func @transform_10(%arg0: i32) -> (i32, i32) {
    %c0_i32 = arith.constant 0 : i32
    %c0_i32_0 = arith.constant 0 : i32
    return %arg0, %c0_i32 : i32, i32
  }
}

</mosaic_0001>

<bundles_post_ra>
// kernel: tpu_custom_call.1
= control target key start
LH: loop header
LB: loop body
LE: loop exit
PB: predicated region body
PF: predicated region fallthrough
CT: control target
= control target key end

     0   :  { %s3306_s0 = inlined_call_operand.vmem [shape: f32[10,256], index: 0, kind: input, shape index: {}]   ;;  %s3307_s1 = inlined_call_operand.vmem [shape: bf16[256,32], index: 1, kind: input, shape index: {}]   ;;  %s3308_s2 = inlined_call_operand.vmem [shape: f32[10,32], index: 2, kind: input, shape index: {}]   ;;  %s3309_s3 = inlined_call_operand.vmem [shape: f32[10,10], index: 3, kind: input, shape index: {}]   ;;  %s3310_s4 = inlined_call_operand.vmem [shape: f32[5,32], index: 4, kind: input, shape index: {}]   ;;  %s3311_s5 = inlined_call_operand.vmem [shape: bf16[2,32,128], index: 5, kind: input, shape index: {}]   ;;  %s3312_s6 = inlined_call_operand.vmem [shape: bf16[2,32,128], index: 6, kind: input, shape index: {}]   ;;  %s3313_s7 = inlined_call_operand.vmem [shape: bf16[2,128,32], index: 7, kind: input, shape index: {}]   ;;  %s3314_s8 = inlined_call_operand.vmem [shape: bf16[32,128], index: 8, kind: input, shape index: {}]   ;;  %s3315_s9 = inlined_call_operand.vmem [shape: f32[1,128], index: 9, kind: input, shape index: {}]   ;;  %s3316_s10 = inlined_call_operand.hbm [shape: f32[10,128], index: 10, kind: output, shape index: {}]  }
   0x1   :  { %v2554_v0 = vld [vmem:[%s3307_s1 + $0x40] sm:$0xff]   ;;  %v2556_v2 = vld [vmem:[%s3307_s1 + $0x48] sm:$0xff]   ;;  %v2558_v4 = vld [vmem:[%s3307_s1 + $0x50] sm:$0xff]  }
   0x2   :  { %v2555_v1 = vld [vmem:[%s3307_s1] sm:$0xff]   ;;  %2220 = vmatprep.subr.bf16.mxu0 %v2554_v0  ;;  %v2557_v3 = vld [vmem:[%s3307_s1 + $0x8] sm:$0xff]   ;;  %v2559_v5 = vld [vmem:[%s3307_s1 + $0x10] sm:$0xff]  }
   0x3   :  { %2221 = vmatpush3.bf16.msra.mxu0 %v2555_v1  ;;  %v2560_v6 = vld [vmem:[%s3307_s1 + $0x58] sm:$0xff]   ;;  %v2562_v8 = vld [vmem:[%s3307_s1 + $0x60] sm:$0xff]   ;;  %v2564_v10 = vld [vmem:[%s3307_s1 + $0x68] sm:$0xff]  }
   0x4   :  { %2222 = vmatprep.subr.bf16.mxu0 %v2556_v2  ;;  %v2561_v7 = vld [vmem:[%s3307_s1 + $0x18] sm:$0xff]   ;;  %v2563_v9 = vld [vmem:[%s3307_s1 + $0x20] sm:$0xff]   ;;  %v38_v11 = vld [vmem:[%s3306_s0 + $0x8] sm:$0xff] }
   0x5   :  { %v40_v12 = vld [vmem:[%s3306_s0 + $0x18] sm:$0x3]  ;;  %v2565_v13 = vld [vmem:[%s3307_s1 + $0x28] sm:$0xff]   ;;  %v2566_v15 = vld [vmem:[%s3307_s1 + $0x70] sm:$0xff]  }
   0x6   :  { %v42_v14 = vpack.c.bf16 %v40_v12, %v38_v11  ;;  %v2567_v16 = vld [vmem:[%s3307_s1 + $0x30] sm:$0xff]   ;;  %v2568_v17 = vld [vmem:[%s3307_s1 + $0x78] sm:$0xff]   ;;  %v37_v19 = vld [vmem:[%s3306_s0] sm:$0xff] }
   0x7   :  { %2223 = vmatpush3.bf16.msra.mxu0 %v2557_v3  ;;  %v2569_v18 = vld [vmem:[%s3307_s1 + $0x38] sm:$0xff]   ;;  %v39_v20 = vld [vmem:[%s3306_s0 + $0x10] sm:$0x3] }
   0x8   :  { %2224 = vmatprep.subr.bf16.mxu0 %v2558_v4  ;;  %205 = vmatprep.mubr.bf16.mxu0 %v42_v14  ;;  %v41_v21 = vpack.c.bf16 %v39_v20, %v37_v19 }
   0xb   :  { %2225 = vmatpush3.bf16.msra.mxu0 %v2559_v5 }
   0xc   :  { %2226 = vmatprep.subr.bf16.mxu0 %v2560_v6 }
   0xf   :  { %2227 = vmatpush3.bf16.msra.mxu0 %v2561_v7 }
  0x10   :  { %2228 = vmatprep.subr.bf16.mxu0 %v2562_v8 }
  0x13   :  { %2229 = vmatpush3.bf16.msra.mxu0 %v2563_v9 }
  0x14   :  { %2230 = vmatprep.subr.bf16.mxu0 %v2564_v10 }
  0x17   :  { %2231 = vmatpush3.bf16.msra.mxu0 %v2565_v13 }
  0x18   :  { %2232 = vmatprep.subr.bf16.mxu0 %v2566_v15 }
  0x1b   :  { %2233 = vmatpush3.bf16.msra.mxu0 %v2567_v16 }
  0x1c   :  { %2234 = vmatprep.subr.bf16.mxu0 %v2568_v17 }
  0x1f   :  { %2235 = vmatpush3.bf16.msra.mxu0 %v2569_v18 }
  0x22   :  { %206 = vmatmul.mubr.bf16.vlgmr.msra.gmra.mrb[0].mxu0 %v41_v21 }
  0x23   :  { %15 = vsyncpa [#allocation3], 0  ;;  %v75_v23 = vld [vmem:[%s3308_s2] sm:$0xff]  ;;  %v76_v27 = vld [vmem:[%s3308_s2 + $0x8] sm:$0x3]  ;;  %vm217_vm0 = vcmask 261120  }
  0x24   :  { %vm221_vm1 = vcmask 254976   ;;  %v2859_v44 = vld [vmem:[%s3311_s5] sm:$0xff]   ;;  %v2704_v45 = vmov 0.0   ;;  %vm2705_vm2 = vmmov 0   ;;  %v2868_v46 = vld [vmem:[%s3311_s5 + $0x8] sm:$0xff]   ;;  %s2706_s20 = smov 96  }
  0x25   :  { %2313 = vmatprep.subr.bf16.mxu1 %v2704_v45  ;;  %2317 = vmatprep.mubr.msk.bf16.mxu1 %vm2705_vm2, %v2704_v45  ;;  %v2141_v56 = vld [vmem:[%s3310_s4] ss:$0 sm:$0xff]  ;;  %s2707_s21 = smov 88   ;;  %s2708_s22 = smov 120   ;;  %vm317_vm3 = vcmask 64512   ;;  %vm369_vm4 = vcmask 80896  }
  0x26   :  { %2314 = vmatpush3.bf16.msra.mxu1 %v2859_v44  ;;  %2351 = vmatprep.subr.bf16.mxu0 %v2704_v45  ;;  %v2899_v5 = vld [vmem:[%s3309_s3] sm:$0xff]  ;;  %v2904_v9 = vld [vmem:[%s3309_s3 + $0x8] sm:$0x3]  ;;  %vm373_vm5 = vcmask 74752   ;;  %s2709_s3 = smov 64   ;;  %vm399_vm6 = vcmask 1044480  }
  0x27   :  { %2315 = vmatprep.subr.bf16.mxu1 %v2704_v45  ;;  %2353 = vmatprep.mubr.msk.bf16.mxu0 %vm2705_vm2, %v2704_v45  ;;  %s2710_s27 = smov 80   ;;  %s2711_s28 = smov 112   ;;  %vm851_vm7 = vcmask 130048   ;;  %vm854_vm8 = vcmask 195584  }
  0x28   :  { %s2712_s29 = smov 72   ;;  %s2713_s30 = smov 56  }
  0x29   :  { %s2714_s11 = smov 104   ;;  %s2715_s12 = smov 48  }
  0x2a   :  { %2316 = vmatpush3.bf16.msra.mxu1 %v2868_v46  ;;  %s2716_s13 = smov 32   ;;  %s2717_s14 = smov 8  }
  0x2b   :  { %2321 = vmatprep.subr.bf16.mxu1 %v2704_v45  ;;  %s2718_s1 = smov 40   ;;  %s2719_s15 = smov 16  }
  0x2c   :  { %s2720_s0 = smov 24  }
  0xf5   :  { %v2236_v22 = vpop.f32.mrb[0].mxu0 }
  0xf6   :  { %v2237_v24 = vpop.f32.mrb[1].mxu0 }
  0xf7   :  { %v2238_v25 = vadd.f32 %v2237_v24, %v2236_v22  ;;  %v2239_v26 = vpop.f32.mrb[2].mxu0 }
  0xf8   :  { %v2240_v28 = vpop.f32.mrb[3].mxu0 }
  0xf9   :  { %v2844_v29 = vadd.f32 %v2238_v25, %v75_v23  ;;  %v2241_v30 = vadd.f32 %v2240_v28, %v2239_v26 }
  0xfb   :  { %v2846_v31 = vadd.f32 %v2241_v30, %v76_v27  ;;  %v218_v32 = vsel %vm217_vm0, %v2844_v29, 0.0 }
  0xfc   :  { %219 = vadd.xlane.f32.xlu0 %v218_v32 }
  0xfd   :  { %v222_v33 = vsel %vm221_vm1, %v2846_v31, 0.0 }
 0x100   :  { %223 = vadd.xlane.f32.xlu0 %v222_v33 }
 0x189   :  { %v220_v34 = vpop.xlane.xlu0 %219 }
 0x18a   :  { %v226_v35 = vmul.f32 0.03125, %v220_v34 }
 0x18c   :  { %v228_v36 = vsub.f32 %v2844_v29, %v226_v35 }
 0x18d   :  { %v224_v37 = vpop.xlane.xlu0 %223 }
 0x18e   :  { %v227_v38 = vmul.f32 0.03125, %v224_v37  ;;  %v230_v39 = vmul.f32 %v228_v36, %v228_v36 }
 0x190   :  { %v229_v40 = vsub.f32 %v2846_v31, %v227_v38  ;;  %v232_v41 = vsel %vm217_vm0, %v230_v39, 0.0 }
 0x191   :  { %233 = vadd.xlane.f32.xlu1 %v232_v41 }
 0x192   :  { %v231_v42 = vmul.f32 %v229_v40, %v229_v40 }
 0x194   :  { %v235_v43 = vsel %vm221_vm1, %v231_v42, 0.0 }
 0x195   :  { %236 = vadd.xlane.f32.xlu1 %v235_v43 }
 0x21e   :  { %v234_v47 = vpop.xlane.xlu1 %233 }
 0x21f   :  { %v238_v48 = vmul.f32 0.03125, %v234_v47 }
 0x221   :  { %v240_v49 = vadd.f32 1e-05, %v238_v48 }
 0x222   :  { %v237_v50 = vpop.xlane.xlu1 %236 }
 0x223   :  { %2596 = vrsqrt.f32 %v240_v49  ;;  %v239_v51 = vmul.f32 0.03125, %v237_v50 }
 0x225   :  { %v241_v52 = vadd.f32 1e-05, %v239_v51 }
 0x227   :  { %2598 = vrsqrt.f32 %v241_v52 }
 0x22d   :  { %v2597_v53 = vpop.eup %2596 }
 0x22e   :  { %v244_v54 = vmul.f32 %v2597_v53, %v228_v36 }
 0x230   :  { %v250_v58 = vmul.f32 %v2141_v56, %v244_v54 }
 0x231   :  { %v2599_v55 = vpop.eup %2598 }
 0x232   :  { %v245_v57 = vmul.f32 %v2599_v55, %v229_v40 }
 0x234   :  { %v251_v59 = vmul.f32 %v2141_v56, %v245_v57 }
 0x236   :  { %v252_v60 = vpack.c.bf16 %v251_v59, %v250_v58 }
 0x238   :  { %2318 = vmatmul.mubr.msk.bf16.vlgmr.msra.gmra.mrb[0].mxu1 %vm217_vm0, %v252_v60 }
 0x239   :  { %2323 = vmatprep.mubr.msk.bf16.mxu1 %vm2705_vm2, %v2704_v45 }
 0x30b   :  { %v306_v61 = vpop.f32.mrb[0].mxu1 }
 0x30c   :  { %v2319_v62 = vpop.f32.mrb[1].mxu1 }
 0x30d   :  { %v309_v63 = vpop.f32.mrb[2].mxu1 }
 0x30e   :  { %v2882_v0 = vpack.c.bf16 %v309_v63, %v306_v61  ;;  %v2320_v1 = vpop.f32.mrb[3].mxu1 }
 0x310   :  { %315 = vrot.lane.b32.xlu0 %v2882_v0, %s2706_s20 }
 0x314   :  { %446 = vrot.lane.b32.xlu0 %v2882_v0, %s2707_s21 }
 0x318   :  { %444 = vrot.lane.b32.xlu0 %v2882_v0, %s2708_s22 }
 0x382   :  { %v316_v2 = vpop.permute.xlu0 %315 }
 0x383   :  { %v322_v3 = vsel %vm317_vm3, %v316_v2, 0 }
 0x384   :  { %2322 = vmatpush3.bf16.xpose.msra.mxu1 %v322_v3 }
 0x385   :  { %2327 = vmatprep.subr.bf16.mxu1 %v2704_v45 }
 0x386   :  { %v447_v36 = vpop.permute.xlu0 %446 }
 0x387   :  { %v452_v38 = vsel %vm317_vm3, %v447_v36, 0 }
 0x38a   :  { %v445_v39 = vpop.permute.xlu0 %444 }
 0x38b   :  { %2324 = vmatmul.mubr.msk.bf16.vlgmr.msra.gmra.mrb[4].mxu1 %vm317_vm3, %v2882_v0 }
 0x38c   :  { %2329 = vmatprep.mubr.msk.bf16.mxu1 %vm2705_vm2, %v2704_v45 }
 0x45e   :  { %v358_v4 = vpop.f32.mrb[4].mxu1 }
 0x45f   :  { %v365_v6 = vmul.f32 0.35355338, %v358_v4  ;;  %v2325_v7 = vpop.f32.mrb[5].mxu1 }
 0x460   :  { %v361_v8 = vpop.f32.mrb[6].mxu1 }
 0x461   :  { %v366_v10 = vmul.f32 0.35355338, %v361_v8  ;;  %v2326_v11 = vpop.f32.mrb[7].mxu1  ;;  %v367_v12 = vadd.f32 %v365_v6, %v2899_v5 }
 0x463   :  { %v370_v13 = vsel %vm369_vm4, %v367_v12, -inf  ;;  %v368_v14 = vadd.f32 %v366_v10, %v2904_v9 }
 0x464   :  { %371 = vmax.xlane.f32.xlu1 %v370_v13 }
 0x465   :  { %v374_v15 = vsel %vm373_vm5, %v368_v14, -inf }
 0x468   :  { %375 = vmax.xlane.f32.xlu1 %v374_v15 }
 0x4f1   :  { %v372_v16 = vpop.xlane.xlu1 %371 }
 0x4f2   :  { %v377_v17 = vsub.f32 %v367_v12, %v372_v16 }
 0x4f4   :  { %v379_v18 = vmul.f32 1.442695, %v377_v17 }
 0x4f5   :  { %v376_v19 = vpop.xlane.xlu1 %375 }
 0x4f6   :  { %2600 = vpow2.f32 %v379_v18  ;;  %v378_v20 = vsub.f32 %v368_v14, %v376_v19 }
 0x4f8   :  { %v381_v21 = vmul.f32 1.442695, %v378_v20 }
 0x4fa   :  { %2602 = vpow2.f32 %v381_v21 }
 0x500   :  { %v2601_v22 = vpop.eup %2600 }
 0x501   :  { %v383_v23 = vsel %vm369_vm4, %v2601_v22, 0.0 }
 0x502   :  { %384 = vadd.xlane.f32.xlu1 %v383_v23 }
 0x504   :  { %v2603_v24 = vpop.eup %2602 }
 0x505   :  { %v386_v25 = vsel %vm373_vm5, %v2603_v24, 0.0 }
 0x506   :  { %387 = vadd.xlane.f32.xlu1 %v386_v25 }
 0x517   :  { %394 = vrot.lane.b32.xlu1 %v2882_v0, %s2709_s3 }
 0x58f   :  { %v385_v26 = vpop.xlane.xlu1 %384 }
 0x590   :  { %2604 = vrcp.f32 %v385_v26 }
 0x593   :  { %v388_v27 = vpop.xlane.xlu1 %387 }
 0x594   :  { %2606 = vrcp.f32 %v388_v27 }
 0x597   :  { %v395_v28 = vpop.permute.xlu1 %394 }
 0x598   :  { %v401_v30 = vsel %vm399_vm6, %v395_v28, 0 }
 0x599   :  { %2328 = vmatpush3.bf16.msra.mxu1 %v401_v30 }
 0x59a   :  { %2333 = vmatprep.subr.bf16.mxu1 %v2704_v45  ;;  %v2605_v32 = vpop.eup %2604 }
 0x59b   :  { %v391_v34 = vmul.f32 %v2605_v32, %v2601_v22 }
 0x59e   :  { %v2607_v33 = vpop.eup %2606 }
 0x59f   :  { %v392_v35 = vmul.f32 %v2607_v33, %v2603_v24 }
 0x5a1   :  { %v393_v37 = vpack.c.bf16 %v392_v35, %v391_v34 }
 0x5a3   :  { %2330 = vmatmul.mubr.msk.bf16.vlgmr.msra.gmra.mrb[8].mxu1 %vm369_vm4, %v393_v37 }
 0x5a4   :  { %2334 = vmatpush3.bf16.xpose.msra.mxu1 %v452_v38  ;;  %2335 = vmatprep.mubr.msk.bf16.mxu1 %vm2705_vm2, %v2704_v45 }
 0x5a5   :  { %2339 = vmatprep.subr.bf16.mxu1 %v2704_v45 }
 0x5ab   :  { %2336 = vmatmul.mubr.msk.bf16.vlgmr.msra.gmra.mrb[12].mxu1 %vm317_vm3, %v445_v39 }
 0x5ac   :  { %2341 = vmatprep.mubr.msk.bf16.mxu1 %vm2705_vm2, %v2704_v45 }
 0x676   :  { %v2924_v40 = vpop.f32.mrb[8].mxu1 }
 0x677   :  { %v2331_v41 = vpop.f32.mrb[9].mxu1 }
 0x678   :  { %v2926_v42 = vpop.f32.mrb[10].mxu1 }
 0x679   :  { %v2332_v43 = vpop.f32.mrb[11].mxu1 }
 0x67e   :  { %v488_v47 = vpop.f32.mrb[12].mxu1 }
 0x67f   :  { %v495_v48 = vmul.f32 0.35355338, %v488_v47  ;;  %v2337_v49 = vpop.f32.mrb[13].mxu1 }
 0x680   :  { %v491_v50 = vpop.f32.mrb[14].mxu1 }
 0x681   :  { %v496_v51 = vmul.f32 0.35355338, %v491_v50  ;;  %v2338_v52 = vpop.f32.mrb[15].mxu1  ;;  %v497_v53 = vadd.f32 %v495_v48, %v2899_v5 }
 0x683   :  { %v499_v54 = vsel %vm369_vm4, %v497_v53, -inf  ;;  %v498_v55 = vadd.f32 %v496_v51, %v2904_v9 }
 0x684   :  { %500 = vmax.xlane.f32.xlu0 %v499_v54 }
 0x685   :  { %v502_v56 = vsel %vm373_vm5, %v498_v55, -inf }
 0x686   :  { %503 = vmax.xlane.f32.xlu1 %v502_v56 }
 0x697   :  { %573 = vrot.lane.b32.xlu1 %v2882_v0, %s2710_s27 }
 0x69b   :  { %571 = vrot.lane.b32.xlu1 %v2882_v0, %s2711_s28 }
 0x69f   :  { %700 = vrot.lane.b32.xlu1 %v2882_v0, %s2712_s29 }
 0x711   :  { %v501_v57 = vpop.xlane.xlu0 %500 }
 0x712   :  { %v505_v58 = vsub.f32 %v497_v53, %v501_v57 }
 0x713   :  { %v504_v59 = vpop.xlane.xlu1 %503 }
 0x714   :  { %v507_v60 = vmul.f32 1.442695, %v505_v58  ;;  %v506_v61 = vsub.f32 %v498_v55, %v504_v59 }
 0x716   :  { %2608 = vpow2.f32 %v507_v60  ;;  %v509_v62 = vmul.f32 1.442695, %v506_v61 }
 0x717   :  { %v574_v11 = vpop.permute.xlu1 %573 }
 0x718   :  { %2610 = vpow2.f32 %v509_v62  ;;  %v579_v17 = vsel %vm317_vm3, %v574_v11, 0 }
 0x71b   :  { %v572_v16 = vpop.permute.xlu1 %571 }
 0x71f   :  { %v701_v18 = vpop.permute.xlu1 %700 }
 0x720   :  { %v2609_v63 = vpop.eup %2608  ;;  %v706_v19 = vsel %vm317_vm3, %v701_v18, 0 }
 0x721   :  { %v511_v1 = vsel %vm369_vm4, %v2609_v63, 0.0 }
 0x722   :  { %v2611_v2 = vpop.eup %2610  ;;  %512 = vadd.xlane.f32.xlu0 %v511_v1 }
 0x723   :  { %v514_v3 = vsel %vm373_vm5, %v2611_v2, 0.0 }
 0x726   :  { %515 = vadd.xlane.f32.xlu0 %v514_v3 }
 0x73c   :  { %522 = vrot.lane.b32.xlu0 %v2882_v0, %s2713_s30 }
 0x740   :  { %698 = vrot.lane.b32.xlu0 %v2882_v0, %s2714_s11 }
 0x7af   :  { %v513_v4 = vpop.xlane.xlu0 %512 }
 0x7b0   :  { %2612 = vrcp.f32 %v513_v4 }
 0x7b3   :  { %v516_v6 = vpop.xlane.xlu0 %515 }
 0x7b4   :  { %2614 = vrcp.f32 %v516_v6 }
 0x7b7   :  { %v523_v7 = vpop.permute.xlu0 %522 }
 0x7b8   :  { %v528_v8 = vsel %vm399_vm6, %v523_v7, 0 }
 0x7b9   :  { %2340 = vmatpush3.bf16.msra.mxu1 %v528_v8 }
 0x7ba   :  { %2345 = vmatprep.subr.bf16.mxu1 %v2704_v45  ;;  %v2613_v10 = vpop.eup %2612 }
 0x7bb   :  { %v519_v13 = vmul.f32 %v2613_v10, %v2609_v63  ;;  %v699_v20 = vpop.permute.xlu0 %698 }
 0x7be   :  { %v2615_v12 = vpop.eup %2614 }
 0x7bf   :  { %v520_v14 = vmul.f32 %v2615_v12, %v2611_v2 }
 0x7c1   :  { %v521_v15 = vpack.c.bf16 %v520_v14, %v519_v13 }
 0x7c3   :  { %2342 = vmatmul.mubr.msk.bf16.vlgmr.msra.gmra.mrb[16].mxu1 %vm369_vm4, %v521_v15 }
 0x7c4   :  { %2346 = vmatpush3.bf16.xpose.msra.mxu1 %v579_v17  ;;  %2347 = vmatprep.mubr.msk.bf16.mxu1 %vm2705_vm2, %v2704_v45 }
 0x7c5   :  { %2357 = vmatprep.subr.bf16.mxu1 %v2704_v45 }
 0x7cb   :  { %2348 = vmatmul.mubr.msk.bf16.vlgmr.msra.gmra.mrb[20].mxu1 %vm317_vm3, %v572_v16 }
 0x7cc   :  { %2358 = vmatpush3.bf16.xpose.msra.mxu1 %v706_v19  ;;  %2359 = vmatprep.mubr.msk.bf16.mxu1 %vm2705_vm2, %v2704_v45 }
 0x7cd   :  { %2369 = vmatprep.subr.bf16.mxu1 %v2704_v45 }
 0x7d3   :  { %2360 = vmatmul.mubr.msk.bf16.vlgmr.msra.gmra.mrb[24].mxu1 %vm317_vm3, %v699_v20 }
 0x7d4   :  { %2373 = vmatprep.mubr.msk.bf16.mxu1 %vm2705_vm2, %v2704_v45 }
 0x896   :  { %v564_v21 = vpop.f32.mrb[16].mxu1 }
 0x897   :  { %v2343_v22 = vpop.f32.mrb[17].mxu1 }
 0x898   :  { %v567_v23 = vpop.f32.mrb[18].mxu1 }
 0x899   :  { %v2524_v24 = vpack.i.bf16 %v567_v23, %v564_v21  ;;  %v2344_v25 = vpop.f32.mrb[19].mxu1 }
 0x89e   :  { %v615_v26 = vpop.f32.mrb[20].mxu1 }
 0x89f   :  { %v622_v27 = vmul.f32 0.35355338, %v615_v26  ;;  %v2349_v28 = vpop.f32.mrb[21].mxu1 }
 0x8a0   :  { %v618_v30 = vpop.f32.mrb[22].mxu1 }
 0x8a1   :  { %v623_v32 = vmul.f32 0.35355338, %v618_v30  ;;  %v2350_v33 = vpop.f32.mrb[23].mxu1  ;;  %v624_v34 = vadd.f32 %v622_v27, %v2899_v5 }
 0x8a3   :  { %v626_v35 = vsel %vm369_vm4, %v624_v34, -inf  ;;  %v625_v36 = vadd.f32 %v623_v32, %v2904_v9 }
 0x8a4   :  { %627 = vmax.xlane.f32.xlu1 %v626_v35 }
 0x8a5   :  { %v629_v37 = vsel %vm373_vm5, %v625_v36, -inf }
 0x8a6   :  { %630 = vmax.xlane.f32.xlu0 %v629_v37  ;;  %v742_v38 = vpop.f32.mrb[24].mxu1 }
 0x8a7   :  { %v749_v39 = vmul.f32 0.35355338, %v742_v38  ;;  %v2361_v41 = vpop.f32.mrb[25].mxu1 }
 0x8a8   :  { %v745_v43 = vpop.f32.mrb[26].mxu1 }
 0x8a9   :  { %v750_v47 = vmul.f32 0.35355338, %v745_v43  ;;  %v2362_v48 = vpop.f32.mrb[27].mxu1  ;;  %v751_v49 = vadd.f32 %v749_v39, %v2899_v5 }
 0x8ab   :  { %v753_v50 = vsel %vm369_vm4, %v751_v49, -inf  ;;  %v752_v51 = vadd.f32 %v750_v47, %v2904_v9 }
 0x8ac   :  { %754 = vmax.xlane.f32.xlu0 %v753_v50 }
 0x8ad   :  { %v756_v52 = vsel %vm373_vm5, %v752_v51, -inf }
 0x8b0   :  { %757 = vmax.xlane.f32.xlu0 %v756_v52 }
 0x931   :  { %v628_v53 = vpop.xlane.xlu1 %627 }
 0x932   :  { %v632_v54 = vsub.f32 %v624_v34, %v628_v53 }
 0x933   :  { %v631_v55 = vpop.xlane.xlu0 %630 }
 0x934   :  { %v634_v56 = vmul.f32 1.442695, %v632_v54  ;;  %v633_v57 = vsub.f32 %v625_v36, %v631_v55 }
 0x936   :  { %2616 = vpow2.f32 %v634_v56  ;;  %v636_v58 = vmul.f32 1.442695, %v633_v57 }
 0x938   :  { %2618 = vpow2.f32 %v636_v58 }
 0x939   :  { %v755_v59 = vpop.xlane.xlu0 %754 }
 0x93a   :  { %v759_v60 = vsub.f32 %v751_v49, %v755_v59 }
 0x93c   :  { %v761_v61 = vmul.f32 1.442695, %v759_v60 }
 0x93d   :  { %v758_v62 = vpop.xlane.xlu0 %757 }
 0x93e   :  { %2620 = vpow2.f32 %v761_v61  ;;  %v760_v63 = vsub.f32 %v752_v51, %v758_v62 }
 0x940   :  { %v2617_v1 = vpop.eup %2616  ;;  %v763_v2 = vmul.f32 1.442695, %v760_v63 }
 0x941   :  { %v638_v3 = vsel %vm369_vm4, %v2617_v1, 0.0 }
 0x942   :  { %v2619_v4 = vpop.eup %2618  ;;  %2622 = vpow2.f32 %v763_v2  ;;  %639 = vadd.xlane.f32.xlu1 %v638_v3 }
 0x943   :  { %v641_v6 = vsel %vm373_vm5, %v2619_v4, 0.0 }
 0x944   :  { %642 = vadd.xlane.f32.xlu0 %v641_v6 }
 0x948   :  { %v2621_v7 = vpop.eup %2620 }
 0x949   :  { %v765_v8 = vsel %vm369_vm4, %v2621_v7, 0.0 }
 0x94a   :  { %766 = vadd.xlane.f32.xlu1 %v765_v8 }
 0x94c   :  { %v2623_v10 = vpop.eup %2622 }
 0x94d   :  { %v768_v11 = vsel %vm373_vm5, %v2623_v10, 0.0 }
 0x94e   :  { %769 = vadd.xlane.f32.xlu0 %v768_v11 }
 0x95b   :  { %649 = vrot.lane.b32.xlu1 %v2882_v0, %s2715_s12 }
 0x95f   :  { %858 = vrot.lane.b32.xlu1 %v2859_v44, %s2716_s13 }
 0x963   :  { %2525 = vrot.lane.b32.xlu1 %v2524_v24, %s2717_s14 }
 0x964   :  { %776 = vrot.lane.b32.xlu0 %v2882_v0, %s2718_s1 }
 0x9cf   :  { %v640_v12 = vpop.xlane.xlu1 %639 }
 0x9d0   :  { %2624 = vrcp.f32 %v640_v12 }
 0x9d1   :  { %v643_v13 = vpop.xlane.xlu0 %642 }
 0x9d2   :  { %2626 = vrcp.f32 %v643_v13 }
 0x9d7   :  { %v767_v14 = vpop.xlane.xlu1 %766 }
 0x9d8   :  { %2628 = vrcp.f32 %v767_v14 }
 0x9da   :  { %v2625_v15 = vpop.eup %2624 }
 0x9db   :  { %v650_v16 = vpop.permute.xlu1 %649  ;;  %v770_v17 = vpop.xlane.xlu0 %769  ;;  %v646_v44 = vmul.f32 %v2625_v15, %v2617_v1  ;;  %v2572_v15 = vld [vmem:[%s3312_s6] sm:$0xff]  }
 0x9dc   :  { %v2627_v18 = vpop.eup %2626  ;;  %v655_v19 = vsel %vm399_vm6, %v650_v16, 0  ;;  %2630 = vrcp.f32 %v770_v17  ;;  %v2573_v16 = vld [vmem:[%s3312_s6 + $0x8] sm:$0xff]   ;;  %v2574_v17 = vld [vmem:[%s3313_s7] sm:$0xff]  }
 0x9dd   :  { %v647_v20 = vmul.f32 %v2627_v18, %v2619_v4  ;;  %2352 = vmatpush3.bf16.msra.mxu0 %v655_v19  ;;  %v2575_v18 = vld [vmem:[%s3313_s7 + $0x8] sm:$0xff]   ;;  %v2576_v19 = vld [vmem:[%s3313_s7 + $0x10] sm:$0xff]  }
 0x9de   :  { %2363 = vmatprep.subr.bf16.mxu0 %v2704_v45 }
 0x9df   :  { %v859_v21 = vpop.permute.xlu1 %858  ;;  %v777_v0 = vpop.permute.xlu0 %776  ;;  %v648_v22 = vpack.c.bf16 %v647_v20, %v646_v44  ;;  %v2577_v44 = vld [vmem:[%s3313_s7 + $0x18] sm:$0xff]   ;;  %v2578_v20 = vld [vmem:[%s3313_s7 + $0x20] sm:$0xff]  }
 0x9e0   :  { %v782_v23 = vsel %vm399_vm6, %v777_v0, 0  ;;  %2370 = vmatpush3.bf16.msra.mxu1 %v859_v21  ;;  %v2579_v21 = vld [vmem:[%s3313_s7 + $0x28] sm:$0xff]  }
 0x9e1   :  { %2354 = vmatmul.mubr.msk.bf16.vlgmr.msra.gmra.mrb[4].mxu0 %vm369_vm4, %v648_v22  ;;  %2371 = vmatprep.subr.bf16.mxu1 %v2704_v45 }
 0x9e2   :  { %2364 = vmatpush3.bf16.msra.mxu0 %v782_v23  ;;  %2365 = vmatprep.mubr.msk.bf16.mxu0 %vm2705_vm2, %v2704_v45  ;;  %v2629_v24 = vpop.eup %2628 }
 0x9e3   :  { %2377 = vmatprep.subr.bf16.mxu0 %v2704_v45  ;;  %v773_v26 = vmul.f32 %v2629_v24, %v2621_v7  ;;  %v2526_v43 = vpop.permute.xlu1 %2525 }
 0x9e4   :  { %v2528_v49 = vunpack.i.h.bf16 %v2526_v43  ;;  %v2527_v50 = vunpack.i.l.bf16 %v2526_v43 }
 0x9e6   :  { %v2631_v25 = vpop.eup %2630  ;;  %v850_v53 = vsel %vm317_vm3, %v2926_v42, %v2528_v49  ;;  %v849_v54 = vsel %vm317_vm3, %v2924_v40, %v2527_v50 }
 0x9e7   :  { %v774_v27 = vmul.f32 %v2631_v25, %v2623_v10 }
 0x9e9   :  { %v775_v28 = vpack.c.bf16 %v774_v27, %v773_v26 }
 0x9eb   :  { %2366 = vmatmul.mubr.msk.bf16.vlgmr.msra.gmra.mrb[8].mxu0 %vm369_vm4, %v775_v28 }
 0x9ec   :  { %2381 = vmatprep.mubr.msk.bf16.mxu0 %vm2705_vm2, %v2704_v45  ;;  %2378 = vmatpush3.bf16.msra.mxu0 %v2572_v15 }
 0x9ed   :  { %2379 = vmatprep.subr.bf16.mxu0 %v2704_v45 }
 0x9f0   :  { %2380 = vmatpush3.bf16.msra.mxu0 %v2573_v16 }
 0x9f1   :  { %2405 = vmatprep.subr.bf16.mxu0 %v2704_v45 }
 0xab4   :  { %v691_v30 = vpop.f32.mrb[4].mxu0 }
 0xab5   :  { %v2355_v32 = vpop.f32.mrb[5].mxu0 }
 0xab6   :  { %v694_v33 = vpop.f32.mrb[6].mxu0  ;;  %v2154_v32 = vld [vmem:[%s3310_s4 + $0x1] ss:$0 sm:$0xff] }
 0xab7   :  { %v2529_v34 = vpack.i.bf16 %v694_v33, %v691_v30  ;;  %v2356_v35 = vpop.f32.mrb[7].mxu0 }
 0xab9   :  { %2530 = vrot.lane.b32.xlu1 %v2529_v34, %s2719_s15 }
 0xabd   :  { %860 = vrot.lane.b32.xlu1 %v2868_v46, %s2716_s13 }
 0xabe   :  { %v818_v36 = vpop.f32.mrb[8].mxu0 }
 0xabf   :  { %v2367_v37 = vpop.f32.mrb[9].mxu0 }
 0xac0   :  { %v821_v38 = vpop.f32.mrb[10].mxu0  ;;  %v2580_v37 = vld [vmem:[%s3313_s7 + $0x30] sm:$0xff]  }
 0xac1   :  { %v2534_v39 = vpack.i.bf16 %v821_v38, %v818_v36  ;;  %v2368_v41 = vpop.f32.mrb[11].mxu0  ;;  %v2581_v38 = vld [vmem:[%s3313_s7 + $0x38] sm:$0xff]  }
 0xac3   :  { %2535 = vrot.lane.b32.xlu0 %v2534_v39, %s2720_s0 }
 0xb2b   :  { %v2531_v47 = vpop.permute.xlu1 %2530 }
 0xb2c   :  { %v2533_v51 = vunpack.i.h.bf16 %v2531_v47  ;;  %v2532_v52 = vunpack.i.l.bf16 %v2531_v47 }
 0xb2e   :  { %v853_v57 = vsel %vm851_vm7, %v850_v53, %v2533_v51  ;;  %v852_v58 = vsel %vm851_vm7, %v849_v54, %v2532_v52 }
 0xb2f   :  { %v861_v48 = vpop.permute.xlu1 %860 }
 0xb30   :  { %2372 = vmatpush3.bf16.msra.mxu1 %v861_v48 }
 0xb31   :  { %2385 = vmatprep.subr.bf16.mxu1 %v2704_v45 }
 0xb35   :  { %v2536_v46 = vpop.permute.xlu0 %2535 }
 0xb36   :  { %v2538_v55 = vunpack.i.h.bf16 %v2536_v46  ;;  %v2537_v56 = vunpack.i.l.bf16 %v2536_v46 }
 0xb38   :  { %v856_v59 = vsel %vm854_vm8, %v853_v57, %v2538_v55  ;;  %v855_v60 = vsel %vm854_vm8, %v852_v58, %v2537_v56 }
 0xb39   :  { %v857_v61 = vpack.c.bf16 %v856_v59, %v855_v60 }
 0xb3b   :  { %2374 = vmatmul.mubr.msk.bf16.vlgmr.msra.gmra.mrb[28].mxu1 %vm217_vm0, %v857_v61 }
 0xb3c   :  { %2401 = vmatprep.mubr.msk.bf16.mxu1 %vm2705_vm2, %v2704_v45  ;;  %2386 = vmatpush3.bf16.msra.mxu1 %v2574_v17 }
 0xb3d   :  { %2387 = vmatprep.subr.bf16.mxu1 %v2704_v45 }
 0xb40   :  { %2388 = vmatpush3.bf16.msra.mxu1 %v2575_v18 }
 0xb41   :  { %2389 = vmatprep.subr.bf16.mxu1 %v2704_v45 }
 0xb44   :  { %2390 = vmatpush3.bf16.msra.mxu1 %v2576_v19 }
 0xb45   :  { %2391 = vmatprep.subr.bf16.mxu1 %v2704_v45 }
 0xb48   :  { %2392 = vmatpush3.bf16.msra.mxu1 %v2577_v44 }
 0xb49   :  { %2393 = vmatprep.subr.bf16.mxu1 %v2704_v45 }
 0xb4c   :  { %2394 = vmatpush3.bf16.msra.mxu1 %v2578_v20 }
 0xb4d   :  { %2395 = vmatprep.subr.bf16.mxu1 %v2704_v45 }
 0xb50   :  { %2396 = vmatpush3.bf16.msra.mxu1 %v2579_v21 }
 0xb51   :  { %2397 = vmatprep.subr.bf16.mxu1 %v2704_v45 }
 0xb54   :  { %2398 = vmatpush3.bf16.msra.mxu1 %v2580_v37 }
 0xb55   :  { %2399 = vmatprep.subr.bf16.mxu1 %v2704_v45 }
 0xb58   :  { %2400 = vmatpush3.bf16.msra.mxu1 %v2581_v38 }
 0xb59   :  { %2431 = vmatprep.subr.bf16.mxu1 %v2704_v45 }
 0xc0e   :  { %v901_v42 = vpop.f32.mrb[28].mxu1 }
 0xc0f   :  { %v3006_v62 = vadd.f32 %v901_v42, %v2844_v29  ;;  %v2375_v40 = vpop.f32.mrb[29].mxu1 }
 0xc10   :  { %v904_v63 = vpop.f32.mrb[30].mxu1 }
 0xc11   :  { %v3009_v1 = vadd.f32 %v904_v63, %v2846_v31  ;;  %v2376_v2 = vpop.f32.mrb[31].mxu1  ;;  %v911_v3 = vsel %vm217_vm0, %v3006_v62, 0.0 }
 0xc12   :  { %912 = vadd.xlane.f32.xlu0 %v911_v3  ;;  %v3084_v3 = vld [vmem:[%s3311_s5 + $0x10] sm:$0xff]  }
 0xc13   :  { %v914_v4 = vsel %vm221_vm1, %v3009_v1, 0.0 }
 0xc14   :  { %915 = vadd.xlane.f32.xlu1 %v914_v4  ;;  %v3090_v4 = vld [vmem:[%s3311_s5 + $0x18] sm:$0xff]  }
 0xc9f   :  { %v913_v6 = vpop.xlane.xlu0 %912 }
 0xca0   :  { %v917_v7 = vmul.f32 0.03125, %v913_v6 }
 0xca1   :  { %v916_v8 = vpop.xlane.xlu1 %915 }
 0xca2   :  { %v919_v29 = vsub.f32 %v3006_v62, %v917_v7  ;;  %v918_v10 = vmul.f32 0.03125, %v916_v8 }
 0xca4   :  { %v920_v11 = vsub.f32 %v3009_v1, %v918_v10  ;;  %v921_v12 = vmul.f32 %v919_v29, %v919_v29 }
 0xca6   :  { %v923_v31 = vsel %vm217_vm0, %v921_v12, 0.0  ;;  %v922_v13 = vmul.f32 %v920_v11, %v920_v11 }
 0xca7   :  { %924 = vadd.xlane.f32.xlu0 %v923_v31 }
 0xca8   :  { %v926_v14 = vsel %vm221_vm1, %v922_v13, 0.0 }
 0xcab   :  { %927 = vadd.xlane.f32.xlu0 %v926_v14  ;;  %v2166_v14 = vld [vmem:[%s3310_s4 + $0x2] ss:$0 sm:$0xff] }
 0xd34   :  { %v925_v0 = vpop.xlane.xlu0 %924 }
 0xd35   :  { %v929_v22 = vmul.f32 0.03125, %v925_v0 }
 0xd37   :  { %v931_v23 = vadd.f32 1e-05, %v929_v22 }
 0xd38   :  { %v928_v24 = vpop.xlane.xlu0 %927 }
 0xd39   :  { %2632 = vrsqrt.f32 %v931_v23  ;;  %v930_v25 = vmul.f32 0.03125, %v928_v24 }
 0xd3b   :  { %v932_v26 = vadd.f32 1e-05, %v930_v25 }
 0xd3d   :  { %2634 = vrsqrt.f32 %v932_v26 }
 0xd43   :  { %v2633_v27 = vpop.eup %2632 }
 0xd44   :  { %v935_v28 = vmul.f32 %v2633_v27, %v919_v29 }
 0xd46   :  { %v941_v34 = vmul.f32 %v2154_v32, %v935_v28 }
 0xd47   :  { %v2635_v30 = vpop.eup %2634 }
 0xd48   :  { %v936_v33 = vmul.f32 %v2635_v30, %v920_v11 }
 0xd4a   :  { %v942_v35 = vmul.f32 %v2154_v32, %v936_v33 }
 0xd4c   :  { %v943_v36 = vpack.c.bf16 %v942_v35, %v941_v34 }
 0xd4e   :  { %2382 = vmatmul.mubr.msk.bf16.vlgmr.msra.gmra.mrb[12].mxu0 %vm217_vm0, %v943_v36 }
 0xd4f   :  { %2409 = vmatprep.mubr.msk.bf16.mxu0 %vm2705_vm2, %v2704_v45  ;;  %2406 = vmatpush3.bf16.msra.mxu0 %v3084_v3 }
 0xd50   :  { %2407 = vmatprep.subr.bf16.mxu0 %v2704_v45 }
 0xd53   :  { %2408 = vmatpush3.bf16.msra.mxu0 %v3090_v4 }
 0xd54   :  { %2413 = vmatprep.subr.bf16.mxu0 %v2704_v45 }
 0xe21   :  { %v997_v39 = vpop.f32.mrb[12].mxu0 }
 0xe22   :  { %v2383_v41 = vpop.f32.mrb[13].mxu0  ;;  %v1004_v47 = vmax.f32 %v997_v39, 0.0 }
 0xe23   :  { %v1000_v43 = vpop.f32.mrb[14].mxu0 }
 0xe24   :  { %v1005_v48 = vmax.f32 %v1000_v43, 0.0  ;;  %v2384_v49 = vpop.f32.mrb[15].mxu0 }
 0xe26   :  { %v1006_v50 = vpack.c.bf16 %v1005_v48, %v1004_v47 }
 0xe28   :  { %2402 = vmatmul.mubr.bf16.vlgmr.msra.gmra.mrb[32].mxu1 %v1006_v50 }
 0xe29   :  { %2433 = vmatprep.mubr.msk.bf16.mxu1 %vm2705_vm2, %v2704_v45 }
 0xefb   :  { %v1105_v51 = vpop.f32.mrb[32].mxu1 }
 0xefc   :  { %v3068_v52 = vadd.f32 %v1105_v51, %v3006_v62  ;;  %v2403_v46 = vpop.f32.mrb[33].mxu1 }
 0xefd   :  { %v1108_v53 = vpop.f32.mrb[34].mxu1 }
 0xefe   :  { %v3071_v54 = vadd.f32 %v1108_v53, %v3009_v1  ;;  %v2404_v55 = vpop.f32.mrb[35].mxu1  ;;  %v1115_v56 = vsel %vm217_vm0, %v3068_v52, 0.0 }
 0xeff   :  { %1116 = vadd.xlane.f32.xlu0 %v1115_v56 }
 0xf00   :  { %v1118_v57 = vsel %vm221_vm1, %v3071_v54, 0.0 }
 0xf01   :  { %1119 = vadd.xlane.f32.xlu1 %v1118_v57 }
 0xf8c   :  { %v1117_v58 = vpop.xlane.xlu0 %1116 }
 0xf8d   :  { %v1121_v59 = vmul.f32 0.03125, %v1117_v58 }
 0xf8e   :  { %v1120_v60 = vpop.xlane.xlu1 %1119 }
 0xf8f   :  { %v1123_v61 = vsub.f32 %v3068_v52, %v1121_v59  ;;  %v1122_v42 = vmul.f32 0.03125, %v1120_v60 }
 0xf91   :  { %v1124_v62 = vsub.f32 %v3071_v54, %v1122_v42  ;;  %v1125_v40 = vmul.f32 %v1123_v61, %v1123_v61 }
 0xf93   :  { %v1127_v63 = vsel %vm217_vm0, %v1125_v40, 0.0  ;;  %v1126_v1 = vmul.f32 %v1124_v62, %v1124_v62 }
 0xf94   :  { %1128 = vadd.xlane.f32.xlu0 %v1127_v63 }
 0xf95   :  { %v1130_v2 = vsel %vm221_vm1, %v1126_v1, 0.0 }
 0xf96   :  { %1131 = vadd.xlane.f32.xlu1 %v1130_v2 }
0x1021   :  { %v1129_v6 = vpop.xlane.xlu0 %1128 }
0x1022   :  { %v1133_v7 = vmul.f32 0.03125, %v1129_v6 }
0x1023   :  { %v1132_v8 = vpop.xlane.xlu1 %1131 }
0x1024   :  { %v1135_v29 = vadd.f32 1e-05, %v1133_v7  ;;  %v1134_v10 = vmul.f32 0.03125, %v1132_v8 }
0x1026   :  { %2636 = vrsqrt.f32 %v1135_v29  ;;  %v1136_v11 = vadd.f32 1e-05, %v1134_v10 }
0x1028   :  { %2638 = vrsqrt.f32 %v1136_v11 }
0x1030   :  { %v2637_v12 = vpop.eup %2636 }
0x1031   :  { %v1139_v31 = vmul.f32 %v2637_v12, %v1123_v61 }
0x1032   :  { %v2639_v13 = vpop.eup %2638 }
0x1033   :  { %v1140_v15 = vmul.f32 %v2639_v13, %v1124_v62  ;;  %v1145_v16 = vmul.f32 %v2166_v14, %v1139_v31 }
0x1035   :  { %v1146_v17 = vmul.f32 %v2166_v14, %v1140_v15 }
0x1037   :  { %v1147_v18 = vpack.c.bf16 %v1146_v17, %v1145_v16 }
0x1039   :  { %2410 = vmatmul.mubr.msk.bf16.vlgmr.msra.gmra.mrb[16].mxu0 %vm217_vm0, %v1147_v18 }
0x103a   :  { %2415 = vmatprep.mubr.msk.bf16.mxu0 %vm2705_vm2, %v2704_v45 }
0x110c   :  { %v1202_v19 = vpop.f32.mrb[16].mxu0 }
0x110d   :  { %v2411_v44 = vpop.f32.mrb[17].mxu0 }
0x110e   :  { %v1205_v20 = vpop.f32.mrb[18].mxu0 }
0x110f   :  { %v3101_v21 = vpack.c.bf16 %v1205_v20, %v1202_v19  ;;  %v2412_v0 = vpop.f32.mrb[19].mxu0 }
0x1111   :  { %1211 = vrot.lane.b32.xlu0 %v3101_v21, %s2706_s20 }
0x1115   :  { %1338 = vrot.lane.b32.xlu0 %v3101_v21, %s2707_s21 }
0x1119   :  { %1336 = vrot.lane.b32.xlu0 %v3101_v21, %s2708_s22 }
0x111d   :  { %1465 = vrot.lane.b32.xlu0 %v3101_v21, %s2710_s27 }
0x1121   :  { %1592 = vrot.lane.b32.xlu0 %v3101_v21, %s2712_s29 }
0x1183   :  { %v1212_v22 = vpop.permute.xlu0 %1211 }
0x1184   :  { %v1217_v23 = vsel %vm317_vm3, %v1212_v22, 0 }
0x1185   :  { %2414 = vmatpush3.bf16.xpose.msra.mxu0 %v1217_v23 }
0x1186   :  { %2419 = vmatprep.subr.bf16.mxu0 %v2704_v45 }
0x1187   :  { %v1339_v57 = vpop.permute.xlu0 %1338 }
0x1188   :  { %v1344_v62 = vsel %vm317_vm3, %v1339_v57, 0 }
0x118b   :  { %v1337_v42 = vpop.permute.xlu0 %1336 }
0x118c   :  { %2416 = vmatmul.mubr.msk.bf16.vlgmr.msra.gmra.mrb[20].mxu0 %vm317_vm3, %v3101_v21 }
0x118d   :  { %2421 = vmatprep.mubr.msk.bf16.mxu0 %vm2705_vm2, %v2704_v45 }
0x118f   :  { %v1466_v40 = vpop.permute.xlu0 %1465 }
0x1190   :  { %v1471_v63 = vsel %vm317_vm3, %v1466_v40, 0 }
0x1193   :  { %v1593_v1 = vpop.permute.xlu0 %1592 }
0x1194   :  { %v1598_v6 = vsel %vm317_vm3, %v1593_v1, 0 }
0x125f   :  { %v1253_v24 = vpop.f32.mrb[20].mxu0 }
0x1260   :  { %v1260_v25 = vmul.f32 0.35355338, %v1253_v24  ;;  %v2417_v26 = vpop.f32.mrb[21].mxu0 }
0x1261   :  { %v1256_v27 = vpop.f32.mrb[22].mxu0 }
0x1262   :  { %v1261_v28 = vmul.f32 0.35355338, %v1256_v27  ;;  %v2418_v30 = vpop.f32.mrb[23].mxu0  ;;  %v1262_v32 = vadd.f32 %v1260_v25, %v2899_v5 }
0x1264   :  { %v1264_v33 = vsel %vm369_vm4, %v1262_v32, -inf  ;;  %v1263_v34 = vadd.f32 %v1261_v28, %v2904_v9 }
0x1265   :  { %1265 = vmax.xlane.f32.xlu1 %v1264_v33 }
0x1266   :  { %v1267_v35 = vsel %vm373_vm5, %v1263_v34, -inf }
0x1269   :  { %1268 = vmax.xlane.f32.xlu1 %v1267_v35 }
0x12f2   :  { %v1266_v36 = vpop.xlane.xlu1 %1265 }
0x12f3   :  { %v1270_v37 = vsub.f32 %v1262_v32, %v1266_v36 }
0x12f5   :  { %v1272_v38 = vmul.f32 1.442695, %v1270_v37 }
0x12f6   :  { %v1269_v39 = vpop.xlane.xlu1 %1268 }
0x12f7   :  { %2640 = vpow2.f32 %v1272_v38  ;;  %v1271_v41 = vsub.f32 %v1263_v34, %v1269_v39 }
0x12f9   :  { %v1274_v43 = vmul.f32 1.442695, %v1271_v41 }
0x12fb   :  { %2642 = vpow2.f32 %v1274_v43 }
0x1301   :  { %v2641_v47 = vpop.eup %2640 }
0x1302   :  { %v1276_v48 = vsel %vm369_vm4, %v2641_v47, 0.0 }
0x1303   :  { %1277 = vadd.xlane.f32.xlu1 %v1276_v48 }
0x1305   :  { %v2643_v49 = vpop.eup %2642 }
0x1306   :  { %v1279_v50 = vsel %vm373_vm5, %v2643_v49, 0.0 }
0x1307   :  { %1280 = vadd.xlane.f32.xlu1 %v1279_v50 }
0x1318   :  { %1287 = vrot.lane.b32.xlu1 %v3101_v21, %s2709_s3  ;;  %s2721_s3 = smov [#allocation2]  }
0x1319   :  { %s2114_s27 = sshll.u32 %s2721_s3, 4  ;;  %s2115_s27 = int_to_ptr.vmem [resolvable:$true] %s2114_s27 }
0x131a   :  { %p2685_p1 = scmp.lt.s32.totalorder %s2115_s27, %s2115_s27 }
0x131c   :  { %1463 = vrot.lane.b32.xlu1 %v3101_v21, %s2711_s28 }
0x1320   :  { %1590 = vrot.lane.b32.xlu1 %v3101_v21, %s2714_s11 }
0x1390   :  { %v1278_v51 = vpop.xlane.xlu1 %1277 }
0x1391   :  { %2644 = vrcp.f32 %v1278_v51 }
0x1394   :  { %v1281_v46 = vpop.xlane.xlu1 %1280 }
0x1395   :  { %2646 = vrcp.f32 %v1281_v46 }
0x1398   :  { %v1288_v53 = vpop.permute.xlu1 %1287 }
0x1399   :  { %v1293_v55 = vsel %vm399_vm6, %v1288_v53, 0 }
0x139a   :  { %2420 = vmatpush3.bf16.msra.mxu0 %v1293_v55 }
0x139b   :  { %2425 = vmatprep.subr.bf16.mxu0 %v2704_v45  ;;  %v2645_v56 = vpop.eup %2644 }
0x139c   :  { %v1284_v59 = vmul.f32 %v2645_v56, %v2641_v47  ;;  %v1464_v2 = vpop.permute.xlu1 %1463 }
0x139f   :  { %v2647_v58 = vpop.eup %2646 }
0x13a0   :  { %v1285_v60 = vmul.f32 %v2647_v58, %v2643_v49  ;;  %v1591_v7 = vpop.permute.xlu1 %1590 }
0x13a2   :  { %v1286_v61 = vpack.c.bf16 %v1285_v60, %v1284_v59 }
0x13a4   :  { %2422 = vmatmul.mubr.msk.bf16.vlgmr.msra.gmra.mrb[24].mxu0 %vm369_vm4, %v1286_v61 }
0x13a5   :  { %2426 = vmatpush3.bf16.xpose.msra.mxu0 %v1344_v62  ;;  %2427 = vmatprep.mubr.msk.bf16.mxu0 %vm2705_vm2, %v2704_v45 }
0x13a6   :  { %2437 = vmatprep.subr.bf16.mxu0 %v2704_v45 }
0x13ac   :  { %2428 = vmatmul.mubr.msk.bf16.vlgmr.msra.gmra.mrb[28].mxu0 %vm317_vm3, %v1337_v42 }
0x13ad   :  { %2438 = vmatpush3.bf16.xpose.msra.mxu0 %v1471_v63  ;;  %2439 = vmatprep.mubr.msk.bf16.mxu0 %vm2705_vm2, %v2704_v45 }
0x13ae   :  { %2449 = vmatprep.subr.bf16.mxu0 %v2704_v45 }
0x13b4   :  { %2440 = vmatmul.mubr.msk.bf16.vlgmr.msra.gmra.mrb[32].mxu0 %vm317_vm3, %v1464_v2 }
0x13b5   :  { %2450 = vmatpush3.bf16.xpose.msra.mxu0 %v1598_v6  ;;  %2451 = vmatprep.mubr.msk.bf16.mxu0 %vm2705_vm2, %v2704_v45 }
0x13b6   :  { %2461 = vmatprep.subr.bf16.mxu0 %v2704_v45 }
0x13bc   :  { %2452 = vmatmul.mubr.msk.bf16.vlgmr.msra.gmra.mrb[36].mxu0 %vm317_vm3, %v1591_v7 }
0x13bd   :  { %2465 = vmatprep.mubr.msk.bf16.mxu0 %vm2705_vm2, %v2704_v45 }
0x1477   :  { %v3151_v8 = vpop.f32.mrb[24].mxu0 }
0x1478   :  { %v2423_v29 = vpop.f32.mrb[25].mxu0 }
0x1479   :  { %v3153_v10 = vpop.f32.mrb[26].mxu0 }
0x147a   :  { %v2424_v11 = vpop.f32.mrb[27].mxu0 }
0x147f   :  { %v1380_v12 = vpop.f32.mrb[28].mxu0 }
0x1480   :  { %v1387_v31 = vmul.f32 0.35355338, %v1380_v12  ;;  %v2429_v13 = vpop.f32.mrb[29].mxu0 }
0x1481   :  { %v1383_v14 = vpop.f32.mrb[30].mxu0 }
0x1482   :  { %v1388_v15 = vmul.f32 0.35355338, %v1383_v14  ;;  %v2430_v16 = vpop.f32.mrb[31].mxu0  ;;  %v1389_v17 = vadd.f32 %v1387_v31, %v2899_v5 }
0x1484   :  { %v1391_v18 = vsel %vm369_vm4, %v1389_v17, -inf  ;;  %v1390_v19 = vadd.f32 %v1388_v15, %v2904_v9 }
0x1485   :  { %1392 = vmax.xlane.f32.xlu0 %v1391_v18 }
0x1486   :  { %v1394_v44 = vsel %vm373_vm5, %v1390_v19, -inf }
0x1487   :  { %1395 = vmax.xlane.f32.xlu1 %v1394_v44  ;;  %v1507_v20 = vpop.f32.mrb[32].mxu0 }
0x1488   :  { %v1514_v0 = vmul.f32 0.35355338, %v1507_v20  ;;  %v2441_v22 = vpop.f32.mrb[33].mxu0 }
0x1489   :  { %v1510_v23 = vpop.f32.mrb[34].mxu0 }
0x148a   :  { %v1515_v24 = vmul.f32 0.35355338, %v1510_v23  ;;  %v2442_v25 = vpop.f32.mrb[35].mxu0  ;;  %v1516_v26 = vadd.f32 %v1514_v0, %v2899_v5 }
0x148c   :  { %v1518_v27 = vsel %vm369_vm4, %v1516_v26, -inf  ;;  %v1517_v28 = vadd.f32 %v1515_v24, %v2904_v9 }
0x148d   :  { %1519 = vmax.xlane.f32.xlu0 %v1518_v27 }
0x148e   :  { %v1521_v34 = vsel %vm373_vm5, %v1517_v28, -inf }
0x148f   :  { %v1634_v30 = vpop.f32.mrb[36].mxu0 }
0x1490   :  { %v1641_v32 = vmul.f32 0.35355338, %v1634_v30  ;;  %v2453_v33 = vpop.f32.mrb[37].mxu0 }
0x1491   :  { %1522 = vmax.xlane.f32.xlu0 %v1521_v34  ;;  %v1637_v35 = vpop.f32.mrb[38].mxu0 }
0x1492   :  { %v1642_v36 = vmul.f32 0.35355338, %v1637_v35  ;;  %v2454_v37 = vpop.f32.mrb[39].mxu0  ;;  %v1643_v38 = vadd.f32 %v1641_v32, %v2899_v5 }
0x1494   :  { %v1645_v39 = vsel %vm369_vm4, %v1643_v38, -inf  ;;  %v1644_v41 = vadd.f32 %v1642_v36, %v2904_v9 }
0x1495   :  { %1646 = vmax.xlane.f32.xlu0 %v1645_v39 }
0x1496   :  { %v1648_v43 = vsel %vm373_vm5, %v1644_v41, -inf }
0x1497   :  { %1649 = vmax.xlane.f32.xlu1 %v1648_v43 }
0x1512   :  { %v1393_v47 = vpop.xlane.xlu0 %1392 }
0x1513   :  { %v1397_v48 = vsub.f32 %v1389_v17, %v1393_v47 }
0x1514   :  { %v1396_v49 = vpop.xlane.xlu1 %1395 }
0x1515   :  { %v1399_v50 = vmul.f32 1.442695, %v1397_v48  ;;  %v1398_v51 = vsub.f32 %v1390_v19, %v1396_v49 }
0x1517   :  { %2648 = vpow2.f32 %v1399_v50  ;;  %v1401_v46 = vmul.f32 1.442695, %v1398_v51 }
0x1519   :  { %2650 = vpow2.f32 %v1401_v46 }
0x151a   :  { %v1520_v53 = vpop.xlane.xlu0 %1519 }
0x151b   :  { %v1524_v55 = vsub.f32 %v1516_v26, %v1520_v53 }
0x151d   :  { %v1526_v56 = vmul.f32 1.442695, %v1524_v55 }
0x151e   :  { %v1523_v5 = vpop.xlane.xlu0 %1522 }
0x151f   :  { %2652 = vpow2.f32 %v1526_v56  ;;  %v1525_v57 = vsub.f32 %v1517_v28, %v1523_v5 }
0x1521   :  { %v2649_v58 = vpop.eup %2648  ;;  %v1528_v9 = vmul.f32 1.442695, %v1525_v57 }
0x1522   :  { %v1647_v59 = vpop.xlane.xlu0 %1646  ;;  %v1403_v60 = vsel %vm369_vm4, %v2649_v58, 0.0 }
0x1523   :  { %v2651_v61 = vpop.eup %2650  ;;  %2654 = vpow2.f32 %v1528_v9  ;;  %v1651_v42 = vsub.f32 %v1643_v38, %v1647_v59  ;;  %1404 = vadd.xlane.f32.xlu0 %v1403_v60 }
0x1524   :  { %v1406_v62 = vsel %vm373_vm5, %v2651_v61, 0.0  ;;  %v1650_v11 = vpop.xlane.xlu1 %1649 }
0x1525   :  { %v1653_v40 = vmul.f32 1.442695, %v1651_v42  ;;  %1407 = vadd.xlane.f32.xlu1 %v1406_v62  ;;  %v1652_v12 = vsub.f32 %v1644_v41, %v1650_v11 }
0x1527   :  { %2656 = vpow2.f32 %v1653_v40  ;;  %v1655_v31 = vmul.f32 1.442695, %v1652_v12 }
0x1529   :  { %v2653_v63 = vpop.eup %2652  ;;  %2658 = vpow2.f32 %v1655_v31 }
0x152a   :  { %v1530_v1 = vsel %vm369_vm4, %v2653_v63, 0.0 }
0x152b   :  { %1531 = vadd.xlane.f32.xlu0 %v1530_v1 }
0x152d   :  { %v2655_v2 = vpop.eup %2654 }
0x152e   :  { %v1533_v6 = vsel %vm373_vm5, %v2655_v2, 0.0 }
0x152f   :  { %1534 = vadd.xlane.f32.xlu1 %v1533_v6 }
0x1531   :  { %v2657_v7 = vpop.eup %2656 }
0x1532   :  { %v1657_v29 = vsel %vm369_vm4, %v2657_v7, 0.0 }
0x1533   :  { %1658 = vadd.xlane.f32.xlu0 %v1657_v29  ;;  %v2659_v13 = vpop.eup %2658 }
0x1534   :  { %v1660_v14 = vsel %vm373_vm5, %v2659_v13, 0.0 }
0x1540   :  { %1541 = vrot.lane.b32.xlu1 %v3101_v21, %s2715_s12 }
0x1549   :  { %1414 = vrot.lane.b32.xlu0 %v3101_v21, %s2713_s30 }
0x1564   :  { %1661 = vadd.xlane.f32.xlu1 %v1660_v14 }
0x1575   :  { %1668 = vrot.lane.b32.xlu1 %v3101_v21, %s2718_s1 }
0x1579   :  { %1748 = vrot.lane.b32.xlu1 %v3084_v3, %s2716_s13 }
0x15b0   :  { %v1405_v16 = vpop.xlane.xlu0 %1404 }
0x15b2   :  { %v1408_v15 = vpop.xlane.xlu1 %1407 }
0x15b3   :  { %2660 = vrcp.f32 %v1408_v15 }
0x15b4   :  { %2662 = vrcp.f32 %v1405_v16 }
0x15b8   :  { %v1532_v17 = vpop.xlane.xlu0 %1531 }
0x15bc   :  { %v1535_v18 = vpop.xlane.xlu1 %1534 }
0x15bd   :  { %2664 = vrcp.f32 %v1535_v18  ;;  %v2661_v19 = vpop.eup %2660 }
0x15be   :  { %2666 = vrcp.f32 %v1532_v17  ;;  %v2663_v20 = vpop.eup %2662  ;;  %v1412_v0 = vmul.f32 %v2661_v19, %v2651_v61 }
0x15bf   :  { %v1411_v23 = vmul.f32 %v2663_v20, %v2649_v58 }
0x15c0   :  { %v1659_v44 = vpop.xlane.xlu0 %1658  ;;  %v1542_v21 = vpop.permute.xlu1 %1541 }
0x15c1   :  { %v1413_v25 = vpack.c.bf16 %v1412_v0, %v1411_v23  ;;  %v1547_v26 = vsel %vm399_vm6, %v1542_v21, 0  ;;  %2668 = vrcp.f32 %v1659_v44 }
0x15c4   :  { %v1415_v22 = vpop.permute.xlu0 %1414 }
0x15c5   :  { %v1420_v24 = vsel %vm399_vm6, %v1415_v22, 0 }
0x15c6   :  { %2432 = vmatpush3.bf16.msra.mxu1 %v1420_v24 }
0x15c7   :  { %2443 = vmatprep.subr.bf16.mxu1 %v2704_v45  ;;  %v2665_v3 = vpop.eup %2664 }
0x15c8   :  { %v2667_v27 = vpop.eup %2666  ;;  %v1539_v28 = vmul.f32 %v2665_v3, %v2655_v2 }
0x15c9   :  { %2434 = vmatmul.mubr.msk.bf16.vlgmr.msra.gmra.mrb[36].mxu1 %vm369_vm4, %v1413_v25  ;;  %v1538_v30 = vmul.f32 %v2667_v27, %v2653_v63  ;;  %v2584_v27 = vld [vmem:[%s3312_s6 + $0x10] sm:$0xff]  }
0x15ca   :  { %2444 = vmatpush3.bf16.msra.mxu1 %v1547_v26  ;;  %2445 = vmatprep.mubr.msk.bf16.mxu1 %vm2705_vm2, %v2704_v45 }
0x15cb   :  { %2455 = vmatprep.subr.bf16.mxu1 %v2704_v45  ;;  %v1540_v32 = vpack.c.bf16 %v1539_v28, %v1538_v30  ;;  %v2669_v36 = vpop.eup %2668  ;;  %v2585_v28 = vld [vmem:[%s3312_s6 + $0x18] sm:$0xff]   ;;  %v2586_v30 = vld [vmem:[%s3313_s7 + $0x40] sm:$0xff]  }
0x15cc   :  { %v1665_v38 = vmul.f32 %v2669_v36, %v2657_v7  ;;  %v2591_v36 = vld [vmem:[%s3313_s7 + $0x68] sm:$0xff]  }
0x15d1   :  { %2446 = vmatmul.mubr.msk.bf16.vlgmr.msra.gmra.mrb[40].mxu1 %vm369_vm4, %v1540_v32  ;;  %v2587_v32 = vld [vmem:[%s3313_s7 + $0x48] sm:$0xff]  }
0x15d2   :  { %2457 = vmatprep.mubr.msk.bf16.mxu1 %vm2705_vm2, %v2704_v45 }
0x15f1   :  { %v1662_v33 = vpop.xlane.xlu1 %1661 }
0x15f2   :  { %2670 = vrcp.f32 %v1662_v33  ;;  %v2588_v33 = vld [vmem:[%s3313_s7 + $0x50] sm:$0xff]  }
0x15f5   :  { %v1669_v34 = vpop.permute.xlu1 %1668 }
0x15f6   :  { %v1674_v35 = vsel %vm399_vm6, %v1669_v34, 0  ;;  %v2589_v34 = vld [vmem:[%s3313_s7 + $0x58] sm:$0xff]  }
0x15f7   :  { %2456 = vmatpush3.bf16.msra.mxu1 %v1674_v35  ;;  %v2590_v35 = vld [vmem:[%s3313_s7 + $0x60] sm:$0xff]  }
0x15f8   :  { %2469 = vmatprep.subr.bf16.mxu1 %v2704_v45 }
0x15f9   :  { %v1749_v43 = vpop.permute.xlu1 %1748 }
0x15fa   :  { %2462 = vmatpush3.bf16.msra.mxu0 %v1749_v43 }
0x15fb   :  { %2463 = vmatprep.subr.bf16.mxu0 %v2704_v45 }
0x15fc   :  { %v2671_v37 = vpop.eup %2670 }
0x15fd   :  { %v1666_v39 = vmul.f32 %v2671_v37, %v2659_v13 }
0x15ff   :  { %v1667_v41 = vpack.c.bf16 %v1666_v39, %v1665_v38 }
0x1601   :  { %2458 = vmatmul.mubr.msk.bf16.vlgmr.msra.gmra.mrb[44].mxu1 %vm369_vm4, %v1667_v41 }
0x1602   :  { %2473 = vmatprep.mubr.msk.bf16.mxu1 %vm2705_vm2, %v2704_v45  ;;  %2470 = vmatpush3.bf16.msra.mxu1 %v2584_v27 }
0x1603   :  { %2471 = vmatprep.subr.bf16.mxu1 %v2704_v45 }
0x1606   :  { %2472 = vmatpush3.bf16.msra.mxu1 %v2585_v28  ;;  %v2216_v28 = vld [vmem:[%s3315_s9] ss:$0 sm:$0xff] }
0x1607   :  { %2497 = vmatprep.subr.bf16.mxu1 %v2704_v45 }
0x169c   :  { %v1456_v47 = vpop.f32.mrb[36].mxu1 }
0x169d   :  { %v2435_v48 = vpop.f32.mrb[37].mxu1 }
0x169e   :  { %v1459_v49 = vpop.f32.mrb[38].mxu1 }
0x169f   :  { %v2539_v50 = vpack.i.bf16 %v1459_v49, %v1456_v47  ;;  %v2436_v51 = vpop.f32.mrb[39].mxu1 }
0x16a0   :  { %v2183_v51 = vld [vmem:[%s3310_s4 + $0x3] ss:$0 sm:$0xff] }
0x16a1   :  { %2540 = vrot.lane.b32.xlu0 %v2539_v50, %s2717_s14 }
0x16a4   :  { %v1583_v46 = vpop.f32.mrb[40].mxu1 }
0x16a5   :  { %v2447_v53 = vpop.f32.mrb[41].mxu1 }
0x16a6   :  { %v1586_v55 = vpop.f32.mrb[42].mxu1 }
0x16a7   :  { %v2544_v56 = vpack.i.bf16 %v1586_v55, %v1583_v46  ;;  %v2448_v5 = vpop.f32.mrb[43].mxu1 }
0x16a8   :  { %v2592_v5 = vld [vmem:[%s3313_s7 + $0x70] sm:$0xff]  }
0x16a9   :  { %2545 = vrot.lane.b32.xlu1 %v2544_v56, %s2719_s15 }
0x16ad   :  { %1750 = vrot.lane.b32.xlu1 %v3090_v4, %s2716_s13 }
0x16d4   :  { %v1710_v57 = vpop.f32.mrb[44].mxu1 }
0x16d5   :  { %v2459_v58 = vpop.f32.mrb[45].mxu1 }
0x16d6   :  { %v1713_v9 = vpop.f32.mrb[46].mxu1 }
0x16d7   :  { %v2549_v59 = vpack.i.bf16 %v1713_v9, %v1710_v57  ;;  %v2460_v60 = vpop.f32.mrb[47].mxu1  ;;  %v2593_v57 = vld [vmem:[%s3313_s7 + $0x78] sm:$0xff]  }
0x16d9   :  { %2550 = vrot.lane.b32.xlu0 %v2549_v59, %s2720_s0 }
0x1713   :  { %v2541_v62 = vpop.permute.xlu0 %2540 }
0x1714   :  { %v2543_v40 = vunpack.i.h.bf16 %v2541_v62  ;;  %v2542_v63 = vunpack.i.l.bf16 %v2541_v62 }
0x1716   :  { %v1742_v4 = vsel %vm317_vm3, %v3153_v10, %v2543_v40  ;;  %v1741_v7 = vsel %vm317_vm3, %v3151_v8, %v2542_v63 }
0x171b   :  { %v2546_v61 = vpop.permute.xlu1 %2545 }
0x171c   :  { %v2548_v1 = vunpack.i.h.bf16 %v2546_v61  ;;  %v2547_v2 = vunpack.i.l.bf16 %v2546_v61 }
0x171e   :  { %v1744_v12 = vsel %vm851_vm7, %v1742_v4, %v2548_v1  ;;  %v1743_v31 = vsel %vm851_vm7, %v1741_v7, %v2547_v2 }
0x171f   :  { %v1751_v42 = vpop.permute.xlu1 %1750 }
0x1720   :  { %2464 = vmatpush3.bf16.msra.mxu0 %v1751_v42 }
0x1721   :  { %2477 = vmatprep.subr.bf16.mxu0 %v2704_v45 }
0x174b   :  { %v2551_v6 = vpop.permute.xlu0 %2550 }
0x174c   :  { %v2553_v29 = vunpack.i.h.bf16 %v2551_v6  ;;  %v2552_v11 = vunpack.i.l.bf16 %v2551_v6 }
0x174e   :  { %v1746_v13 = vsel %vm854_vm8, %v1744_v12, %v2553_v29  ;;  %v1745_v14 = vsel %vm854_vm8, %v1743_v31, %v2552_v11 }
0x174f   :  { %v1747_v15 = vpack.c.bf16 %v1746_v13, %v1745_v14 }
0x1751   :  { %2466 = vmatmul.mubr.msk.bf16.vlgmr.msra.gmra.mrb[40].mxu0 %vm217_vm0, %v1747_v15 }
0x1752   :  { %2493 = vmatprep.mubr.msk.bf16.mxu0 %vm2705_vm2, %v2704_v45  ;;  %2478 = vmatpush3.bf16.msra.mxu0 %v2586_v30 }
0x1753   :  { %2479 = vmatprep.subr.bf16.mxu0 %v2704_v45 }
0x1756   :  { %2480 = vmatpush3.bf16.msra.mxu0 %v2587_v32 }
0x1757   :  { %2481 = vmatprep.subr.bf16.mxu0 %v2704_v45 }
0x175a   :  { %2482 = vmatpush3.bf16.msra.mxu0 %v2588_v33 }
0x175b   :  { %2483 = vmatprep.subr.bf16.mxu0 %v2704_v45 }
0x175e   :  { %2484 = vmatpush3.bf16.msra.mxu0 %v2589_v34 }
0x175f   :  { %2485 = vmatprep.subr.bf16.mxu0 %v2704_v45 }
0x1762   :  { %2486 = vmatpush3.bf16.msra.mxu0 %v2590_v35 }
0x1763   :  { %2487 = vmatprep.subr.bf16.mxu0 %v2704_v45 }
0x1766   :  { %2488 = vmatpush3.bf16.msra.mxu0 %v2591_v36 }
0x1767   :  { %2489 = vmatprep.subr.bf16.mxu0 %v2704_v45 }
0x176a   :  { %2490 = vmatpush3.bf16.msra.mxu0 %v2592_v5 }
0x176b   :  { %2491 = vmatprep.subr.bf16.mxu0 %v2704_v45 }
0x176e   :  { %2492 = vmatpush3.bf16.msra.mxu0 %v2593_v57 }
0x1824   :  { %v1791_v10 = vpop.f32.mrb[40].mxu0 }
0x1825   :  { %v3215_v16 = vadd.f32 %v1791_v10, %v3068_v52  ;;  %v2467_v8 = vpop.f32.mrb[41].mxu0 }
0x1826   :  { %v1794_v17 = vpop.f32.mrb[42].mxu0 }
0x1827   :  { %v3218_v18 = vadd.f32 %v1794_v17, %v3071_v54  ;;  %v2468_v19 = vpop.f32.mrb[43].mxu0  ;;  %v1801_v44 = vsel %vm217_vm0, %v3215_v16, 0.0 }
0x1828   :  { %1802 = vadd.xlane.f32.xlu0 %v1801_v44  ;;  %v2595_v19 = vld [vmem:[%s3314_s8 + $0x8] sm:$0xff]  }
0x1829   :  { %v1804_v20 = vsel %vm221_vm1, %v3218_v18, 0.0 }
0x182a   :  { %1805 = vadd.xlane.f32.xlu1 %v1804_v20 }
0x18b5   :  { %v1803_v0 = vpop.xlane.xlu0 %1802 }
0x18b6   :  { %v1807_v22 = vmul.f32 0.03125, %v1803_v0 }
0x18b7   :  { %v1806_v23 = vpop.xlane.xlu1 %1805 }
0x18b8   :  { %v1809_v52 = vsub.f32 %v3215_v16, %v1807_v22  ;;  %v1808_v24 = vmul.f32 0.03125, %v1806_v23 }
0x18ba   :  { %v1810_v21 = vsub.f32 %v3218_v18, %v1808_v24  ;;  %v1811_v25 = vmul.f32 %v1809_v52, %v1809_v52 }
0x18bc   :  { %v1813_v54 = vsel %vm217_vm0, %v1811_v25, 0.0  ;;  %v1812_v3 = vmul.f32 %v1810_v21, %v1810_v21 }
0x18bd   :  { %1814 = vadd.xlane.f32.xlu0 %v1813_v54 }
0x18be   :  { %v1816_v26 = vsel %vm221_vm1, %v1812_v3, 0.0 }
0x18c1   :  { %1817 = vadd.xlane.f32.xlu0 %v1816_v26 }
0x194a   :  { %v1815_v37 = vpop.xlane.xlu0 %1814 }
0x194b   :  { %v1819_v38 = vmul.f32 0.03125, %v1815_v37 }
0x194d   :  { %v1821_v39 = vadd.f32 1e-05, %v1819_v38 }
0x194e   :  { %v1818_v41 = vpop.xlane.xlu0 %1817 }
0x194f   :  { %2672 = vrsqrt.f32 %v1821_v39  ;;  %v1820_v43 = vmul.f32 0.03125, %v1818_v41 }
0x1951   :  { %v1822_v47 = vadd.f32 1e-05, %v1820_v43 }
0x1953   :  { %2674 = vrsqrt.f32 %v1822_v47 }
0x1959   :  { %v2673_v48 = vpop.eup %2672 }
0x195a   :  { %v1825_v49 = vmul.f32 %v2673_v48, %v1809_v52 }
0x195c   :  { %v1831_v53 = vmul.f32 %v2183_v51, %v1825_v49 }
0x195d   :  { %v2675_v50 = vpop.eup %2674 }
0x195e   :  { %v1826_v46 = vmul.f32 %v2675_v50, %v1810_v21 }
0x1960   :  { %v1832_v55 = vmul.f32 %v2183_v51, %v1826_v46 }
0x1962   :  { %v1833_v56 = vpack.c.bf16 %v1832_v55, %v1831_v53 }
0x1964   :  { %2474 = vmatmul.mubr.msk.bf16.vlgmr.msra.gmra.mrb[48].mxu1 %vm217_vm0, %v1833_v56 }
0x1965   :  { %2501 = vmatprep.mubr.msk.bf16.mxu1 %vm2705_vm2, %v2704_v45 }
0x1a37   :  { %v1888_v58 = vpop.f32.mrb[48].mxu1 }
0x1a38   :  { %v2475_v9 = vpop.f32.mrb[49].mxu1  ;;  %v1895_v60 = vmax.f32 %v1888_v58, 0.0 }
0x1a39   :  { %v1891_v59 = vpop.f32.mrb[50].mxu1 }
0x1a3a   :  { %v1896_v61 = vmax.f32 %v1891_v59, 0.0  ;;  %v2476_v42 = vpop.f32.mrb[51].mxu1 }
0x1a3c   :  { %v1897_v62 = vpack.c.bf16 %v1896_v61, %v1895_v60 }
0x1a3e   :  { %2494 = vmatmul.mubr.bf16.vlgmr.msra.gmra.mrb[44].mxu0 %v1897_v62 }
0x1b11   :  { %v1997_v40 = vpop.f32.mrb[44].mxu0 }
0x1b12   :  { %v2004_v63 = vadd.f32 %v1997_v40, %v3215_v16  ;;  %v2495_v1 = vpop.f32.mrb[45].mxu0 }
0x1b13   :  { %v2000_v2 = vpop.f32.mrb[46].mxu0 }
0x1b14   :  { %v2005_v6 = vadd.f32 %v2000_v2, %v3218_v18  ;;  %v2496_v4 = vpop.f32.mrb[47].mxu0  ;;  %v2007_v7 = vsel %vm217_vm0, %v2004_v63, 0.0  ;;  %v2594_v18 = vld [vmem:[%s3314_s8] sm:$0xff]  }
0x1b15   :  { %2008 = vadd.xlane.f32.xlu0 %v2007_v7  ;;  %2498 = vmatpush3.bf16.msra.mxu1 %v2594_v18 }
0x1b16   :  { %v2010_v29 = vsel %vm221_vm1, %v2005_v6, 0.0  ;;  %2499 = vmatprep.subr.bf16.mxu1 %v2704_v45  ;;  %v2215_v45 = vld [vmem:[%s3310_s4 + $0x4] ss:$0 sm:$0xff]  ;;  %s2680_s4 = scalar_lea.vmem %s2115_s27, 256 }
0x1b17   :  { %2011 = vadd.xlane.f32.xlu1 %v2010_v29  ;;  %p2681_p0 = scmp.ne.s32.totalorder %s2115_s27, %s2680_s4  ;;  %p2686_p2 = scmp.lt.s32.totalorder %s2680_s4, %s2680_s4 }
0x1b19   :  { %2500 = vmatpush3.bf16.msra.mxu1 %v2595_v19  ;;  %p2687_p3 = por %p2686_p2, %p2685_p1 }
0x1b1b   :  { %p2688_p4 = pnand %p2687_p3, %p2681_p0 }
0x1ba2   :  { %v2009_v11 = vpop.xlane.xlu0 %2008 }
0x1ba3   :  { %v2013_v12 = vmul.f32 0.03125, %v2009_v11 }
0x1ba4   :  { %v2012_v31 = vpop.xlane.xlu1 %2011 }
0x1ba5   :  { %v2015_v13 = vsub.f32 %v2004_v63, %v2013_v12  ;;  %v2014_v14 = vmul.f32 0.03125, %v2012_v31 }
0x1ba7   :  { %v2016_v15 = vsub.f32 %v2005_v6, %v2014_v14  ;;  %v2017_v10 = vmul.f32 %v2015_v13, %v2015_v13 }
0x1ba9   :  { %v2019_v16 = vsel %vm217_vm0, %v2017_v10, 0.0  ;;  %v2018_v8 = vmul.f32 %v2016_v15, %v2016_v15 }
0x1baa   :  { %2020 = vadd.xlane.f32.xlu0 %v2019_v16 }
0x1bab   :  { %v2022_v17 = vsel %vm221_vm1, %v2018_v8, 0.0 }
0x1bac   :  { %2023 = vadd.xlane.f32.xlu1 %v2022_v17 }
0x1c37   :  { %v2021_v44 = vpop.xlane.xlu0 %2020 }
0x1c38   :  { %v2025_v20 = vmul.f32 0.03125, %v2021_v44 }
0x1c39   :  { %v2024_v0 = vpop.xlane.xlu1 %2023 }
0x1c3a   :  { %v2027_v22 = vadd.f32 1e-05, %v2025_v20  ;;  %v2026_v23 = vmul.f32 0.03125, %v2024_v0 }
0x1c3c   :  { %2676 = vrsqrt.f32 %v2027_v22  ;;  %v2028_v52 = vadd.f32 1e-05, %v2026_v23 }
0x1c3e   :  { %2678 = vrsqrt.f32 %v2028_v52 }
0x1c46   :  { %v2677_v24 = vpop.eup %2676 }
0x1c47   :  { %v2031_v21 = vmul.f32 %v2677_v24, %v2015_v13 }
0x1c48   :  { %v2679_v25 = vpop.eup %2678 }
0x1c49   :  { %v2032_v54 = vmul.f32 %v2679_v25, %v2016_v15  ;;  %v2037_v3 = vmul.f32 %v2215_v45, %v2031_v21 }
0x1c4b   :  { %v2038_v26 = vmul.f32 %v2215_v45, %v2032_v54 }
0x1c4d   :  { %v2039_v27 = vpack.c.bf16 %v2038_v26, %v2037_v3 }
0x1c4f   :  { %2502 = vmatmul.mubr.msk.bf16.vlgmr.msra.gmra.mrb[52].mxu1 %vm217_vm0, %v2039_v27 }
0x1d22   :  { %v2100_v30 = vpop.f32.mrb[52].mxu1 }
0x1d23   :  { %v2101_v32 = vadd.f32 %v2216_v28, %v2100_v30  ;;  %v2503_v33 = vpop.f32.mrb[53].mxu1 }
0x1d24   :  { %v2103_v34 = vpop.f32.mrb[54].mxu1 }
0x1d25   :  { %2107 = vst [vmem:[#allocation2] sm:$0xff] %v2101_v32  ;;  %v2104_v35 = vadd.f32 %v2216_v28, %v2103_v34  ;;  %v2504_v36 = vpop.f32.mrb[55].mxu1 }
0x1d27   :  { %2108 = vst [vmem:[#allocation2 + $0x8] sm:$0x3] %v2104_v35 }
0x1d28   :  { %2691 = shalt.err (!%p2688_p4)
}
0x1d29   :  { %s2692_s29 = scalar_lea.hbm %s3316_s10, 256 }
0x1d2a   :  { %p2693_p5 = scmp.ne.s32.totalorder %s3316_s10, %s2692_s29  ;;  %p2696_p6 = scmp.lt.u32.totalorder %s2692_s29, %s3316_s10 }
0x1d2c   :  { %p2698_p7 = pnand %p2696_p6, %p2693_p5 }
0x1d2e   :  { %2701 = shalt.err (!%p2698_p7)
}
0x1d2f   :  { %s2722_s13 = smov 128  }
0x1d30   :  { %2120 = dma.vmem_to_hbm [thread:$0]  %s2115_s27, 256, %s3316_s10, [#allocation3], %s2722_s13, %s2722_s13, %s2717_s14  }
0x1d31   :  { %2702 = dma.done.wait [#allocation3], 256  }
0x1d32   :  { %2703 = vsyncadd [#allocation3], 4294967040 }
0x1d33   :  { %2124 = vsyncpa [#allocation3], 1 }

</bundles_post_ra>
